<compile_context>
chip_gen: v6e
topology: v6e:2x2x1
jax: 0.10.0
libtpu: 0.0.40
codegen_flags: <defaults>
</compile_context>

<pallas_src>
import functools

import jax
import jax.numpy as jnp
from jax.experimental import pallas as pl
from jax.experimental.pallas import tpu as pltpu

LANE = 128


def _round_up(v, m):
    return ((v + m - 1) // m) * m


def _vmem_capacity_bytes():
    try:
        return int(pltpu.get_tpu_info().vmem_capacity_bytes)
    except Exception:
        return 64 * 1024 * 1024  # conservative fallback: v7x per-TensorCore VMEM


def _vmem_limit_bytes(required, cap):
    # 2x headroom over the computed working set, >= 32 MiB (v5e scoped default is
    # only 16 MiB), and below the physical capacity of the running generation.
    return int(min(cap - 2 * 1024 * 1024, max(2 * required, 32 * 1024 * 1024)))


def _prepare(a_dense, x, w1, b1, w2, b2):
    """Pad nodes to a multiple of 128 and every feature axis to 128 lanes."""
    n, f_in = x.shape
    k1, _, hdim = w1.shape
    k2, _, c = w2.shape

    n_pad = max(_round_up(n, LANE), LANE)
    fp = _round_up(f_in, LANE)
    hp = _round_up(hdim, LANE)
    cp = _round_up(c, LANE)

    a_p = jnp.zeros((n_pad, n_pad), jnp.float32).at[:n, :n].set(a_dense)
    x_p = jnp.zeros((n_pad, fp), jnp.float32).at[:n, :f_in].set(x)

    # D^{-1/2} from the row degree.  NOTE: this matches PyG gcn_norm only for
    # symmetric (undirected, both-direction) unit-weight adjacency.
    deg = jnp.sum(a_p, axis=1, keepdims=True)
    dinv = jnp.where(deg > 0, jax.lax.rsqrt(jnp.maximum(deg, 1.0)), 0.0)
    dinv = dinv.astype(jnp.float32)

    w1_p = (jnp.zeros((k1, fp, hp), jnp.float32)
            .at[:, :f_in, :hdim].set(w1).astype(jnp.bfloat16))
    w2_p = (jnp.zeros((k2, hp, cp), jnp.float32)
            .at[:, :hdim, :c].set(w2).astype(jnp.bfloat16))
    b1_p = jnp.zeros((1, hp), jnp.float32).at[:, :hdim].set(b1)
    b2_p = jnp.zeros((1, cp), jnp.float32).at[:, :c].set(b2)

    dims = (n, c, n_pad, fp, hp, cp)
    return a_p, dinv, x_p, w1_p, b1_p, w2_p, b2_p, dims


# ----------------------------------------------------------------------------
# Path 1: whole-graph-resident fused kernel (small graphs).
# ----------------------------------------------------------------------------
def _tagcn_resident_kernel(a_ref, dinv_ref, x_ref, w1_ref, b1_ref, w2_ref,
                           b2_ref, out_ref):
    a = a_ref[...]                          # [N, N] bf16 adjacency (0/1 exact)
    dinv = dinv_ref[...]                    # [N, 1] f32

    def propagate(h):
        # A_hat @ h == dinv * (A @ (dinv * h)); scaling stays f32 on the vectors.
        hs = (dinv * h).astype(jnp.bfloat16)
        return dinv * jnp.dot(a, hs, preferred_element_type=jnp.float32)

    def project(h0, h1, h2, w_ref, b_ref):
        # Accumulate three bf16 dots (no sub-128-lane concatenation).
        acc = jnp.dot(h0.astype(jnp.bfloat16), w_ref[0],
                      preferred_element_type=jnp.float32)
        acc = acc + jnp.dot(h1.astype(jnp.bfloat16), w_ref[1],
                            preferred_element_type=jnp.float32)
        acc = acc + jnp.dot(h2.astype(jnp.bfloat16), w_ref[2],
                            preferred_element_type=jnp.float32)
        return acc + b_ref[...]

    # ---- conv1: TAGConv(F_in -> H, K=2) ----
    x0 = x_ref[...]
    x1 = propagate(x0)
    x2 = propagate(x1)
    h = jnp.maximum(project(x0, x1, x2, w1_ref, b1_ref), 0.0)
    # TODO(synk): training-mode dropout (random mask + 1/(1-p) scale) not implemented.

    # ---- conv2: TAGConv(H -> C, K=2) ----
    h1 = propagate(h)
    h2 = propagate(h1)
    out_ref[...] = project(h, h1, h2, w2_ref, b2_ref).astype(out_ref.dtype)


def tagcn_forward_resident(a_dense, x, w1, b1, w2, b2):
    a_p, dinv, x_p, w1_p, b1_p, w2_p, b2_p, dims = _prepare(a_dense, x, w1, b1, w2, b2)
    n, c, n_pad, fp, hp, cp = dims
    cap = _vmem_capacity_bytes()

    fmax = max(fp, hp, cp)
    required = (2 * n_pad * n_pad            # bf16 adjacency (resident, no upcast temp)
                + n_pad * 4                  # dinv
                + n_pad * fp * 4             # x
                + 6 * n_pad * fmax * 4       # hop / projection temporaries
                + (w1_p.size + w2_p.size) * 2
                + (b1_p.size + b2_p.size) * 4
                + n_pad * cp * 4)            # lane-dense output

    vmem = pl.BlockSpec(memory_space=pltpu.MemorySpace.VMEM)
    out_p = pl.pallas_call(
        _tagcn_resident_kernel,
        out_shape=jax.ShapeDtypeStruct((n_pad, cp), jnp.float32),
        in_specs=[vmem] * 7,
        out_specs=vmem,
        compiler_params=pltpu.CompilerParams(
            vmem_limit_bytes=_vmem_limit_bytes(required, cap)),
    )(a_p.astype(jnp.bfloat16), dinv, x_p, w1_p, b1_p, w2_p, b2_p)
    return out_p[:n, :c]


# ----------------------------------------------------------------------------
# Path 2: row-tiled streamed kernels (large graphs): one pallas_call per hop,
# the last hop of each layer fused with the projection.  A is int8 in HBM.
# ----------------------------------------------------------------------------
def _hop_kernel(a_ref, dinv_ref, hsrc_ref, out_ref):
    a = a_ref[...].astype(jnp.bfloat16)      # int8 0/1 -> bf16 (exact) on VPU
    y = jnp.dot(a, hsrc_ref[...], preferred_element_type=jnp.float32)
    out_ref[...] = dinv_ref[...] * y


def _hop_project_kernel(a_ref, dinv_ref, hsrc_ref, h0_ref, h1_ref, w_ref, b_ref,
                        out_ref, *, apply_relu):
    a = a_ref[...].astype(jnp.bfloat16)
    h2 = dinv_ref[...] * jnp.dot(a, hsrc_ref[...],
                                 preferred_element_type=jnp.float32)
    acc = jnp.dot(h0_ref[...].astype(jnp.bfloat16), w_ref[0],
                  preferred_element_type=jnp.float32)
    acc = acc + jnp.dot(h1_ref[...].astype(jnp.bfloat16), w_ref[1],
                        preferred_element_type=jnp.float32)
    acc = acc + jnp.dot(h2.astype(jnp.bfloat16), w_ref[2],
                        preferred_element_type=jnp.float32)
    acc = acc + b_ref[...]
    if apply_relu:
        acc = jnp.maximum(acc, 0.0)
    out_ref[...] = acc.astype(out_ref.dtype)


def _pick_tm(n_pad, cap):
    """Largest 128-multiple row block whose double-buffered int8 A slab fits ~1/3 of VMEM."""
    budget = max(cap // 3, 4 * 1024 * 1024)
    tm = (min(n_pad, 1024) // LANE) * LANE
    while tm > LANE and (2 * tm * n_pad > budget or n_pad % tm != 0):
        tm -= LANE
    return max(tm, LANE)


def _hop_call(a_i8, dinv, hsrc_bf16, tm, n_pad, f, vmem_limit):
    return pl.pallas_call(
        _hop_kernel,
        out_shape=jax.ShapeDtypeStruct((n_pad, f), jnp.float32),
        grid=(n_pad // tm,),
        in_specs=[
            pl.BlockSpec((tm, n_pad), lambda i: (i, 0)),    # A row block (int8)
            pl.BlockSpec((tm, 1), lambda i: (i, 0)),        # dinv row block
            pl.BlockSpec((n_pad, f), lambda i: (0, 0)),     # scaled source hops (resident)
        ],
        out_specs=pl.BlockSpec((tm, f), lambda i: (i, 0)),
        compiler_params=pltpu.CompilerParams(
            dimension_semantics=("parallel",),
            vmem_limit_bytes=vmem_limit),
    )(a_i8, dinv, hsrc_bf16)


def _hop_project_call(a_i8, dinv, hsrc_bf16, h0, h1, w, b, apply_relu,
                      tm, n_pad, fin, fout, vmem_limit):
    kern = functools.partial(_hop_project_kernel, apply_relu=apply_relu)
    return pl.pallas_call(
        kern,
        out_shape=jax.ShapeDtypeStruct((n_pad, fout), jnp.float32),
        grid=(n_pad // tm,),
        in_specs=[
            pl.BlockSpec((tm, n_pad), lambda i: (i, 0)),      # A row block (int8)
            pl.BlockSpec((tm, 1), lambda i: (i, 0)),          # dinv row block
            pl.BlockSpec((n_pad, fin), lambda i: (0, 0)),     # scaled hop-1 source (resident)
            pl.BlockSpec((tm, fin), lambda i: (i, 0)),        # hop-0 row block
            pl.BlockSpec((tm, fin), lambda i: (i, 0)),        # hop-1 row block
            pl.BlockSpec((3, fin, fout), lambda i: (0, 0, 0)),  # stacked weights (bf16)
            pl.BlockSpec((1, fout), lambda i: (0, 0)),        # bias
        ],
        out_specs=pl.BlockSpec((tm, fout), lambda i: (i, 0)),
        compiler_params=pltpu.CompilerParams(
            dimension_semantics=("parallel",),
            vmem_limit_bytes=vmem_limit),
    )(a_i8, dinv, hsrc_bf16, h0, h1, w, b)


def tagcn_forward_tiled(a_dense, x, w1, b1, w2, b2):
    a_p, dinv, x_p, w1_p, b1_p, w2_p, b2_p, dims = _prepare(a_dense, x, w1, b1, w2, b2)
    n, c, n_pad, fp, hp, cp = dims
    a_i8 = a_p.astype(jnp.int8)              # entries are exactly 0/1

    cap = _vmem_capacity_bytes()
    tm = _pick_tm(n_pad, cap)
    fmax = max(fp, hp, cp)
    per_call = (2 * tm * n_pad               # double-buffered int8 A blocks
                + tm * n_pad * 2             # in-kernel bf16 upcast temporary
                + 2 * tm * 4                 # dinv blocks
                + n_pad * fmax * 2           # resident scaled source hops (bf16)
                + 3 * fmax * fmax * 2        # stacked weights
                + 4 * tm * fmax * 4          # hop-0/hop-1 row blocks (double buffered)
                + 2 * tm * fmax * 4)         # output blocks (double buffered)
    vlim = _vmem_limit_bytes(per_call, cap)

    def scale(h):                            # source-side D^{-1/2} scaling, bf16 for the MXU
        return (dinv * h).astype(jnp.bfloat16)

    # ---- conv1 ----
    x1 = _hop_call(a_i8, dinv, scale(x_p), tm, n_pad, fp, vlim)
    h = _hop_project_call(a_i8, dinv, scale(x1), x_p, x1, w1_p, b1_p, True,
                          tm, n_pad, fp, hp, vlim)
    # relu fused above; dropout(p=0.5) is identity in eval mode.
    # ---- conv2 ----
    h1 = _hop_call(a_i8, dinv, scale(h), tm, n_pad, hp, vlim)
    out_p = _hop_project_call(a_i8, dinv, scale(h1), h, h1, w2_p, b2_p, False,
                              tm, n_pad, hp, cp, vlim)
    return out_p[:n, :c]


def tagcn_forward(a_dense, x, w1, b1, w2, b2):
    """Dispatch: whole-graph residency if it comfortably fits VMEM, else tiled."""
    n, f_in = x.shape
    hdim, c = w1.shape[2], w2.shape[2]
    n_pad = max(_round_up(n, LANE), LANE)
    fmax = max(_round_up(f_in, LANE), _round_up(hdim, LANE), _round_up(c, LANE))
    cap = _vmem_capacity_bytes()
    approx_resident = 2 * n_pad * n_pad + 10 * n_pad * fmax * 4
    if approx_resident <= int(0.5 * cap):
        return tagcn_forward_resident(a_dense, x, w1, b1, w2, b2)
    return tagcn_forward_tiled(a_dense, x, w1, b1, w2, b2)


# ----------------------------------------------------------------------------
# Pure-JAX f32 reference (PyG TAGConv semantics) and example driver.
# ----------------------------------------------------------------------------
def tagcn_reference(a_dense, x, w1, b1, w2, b2):
    deg = jnp.sum(a_dense, axis=1, keepdims=True)
    dinv = jnp.where(deg > 0, 1.0 / jnp.sqrt(jnp.maximum(deg, 1.0)), 0.0)
    a_hat = dinv * a_dense * dinv.T

    def conv(h, w, b):
        h0 = h
        h1 = a_hat @ h0
        h2 = a_hat @ h1
        return h0 @ w[0] + h1 @ w[1] + h2 @ w[2] + b

    h = jax.nn.relu(conv(x, w1, b1))
    return conv(h, w2, b2)


def build_dense_adjacency(edge_index, num_nodes):
    src, dst = edge_index[0], edge_index[1]
    a = jnp.zeros((num_nodes, num_nodes), jnp.float32)
    # A[dst, src] = 1.0  (messages flow source -> target)
    return a.at[dst, src].set(1.0)


if __name__ == "__main__":
    conf = {"num_features": 4, "hidden_channels": 32, "num_classes": 7}
    N = 16  # number of graph nodes

    key = jax.random.PRNGKey(0)
    k_x, k_w10, k_w11, k_w12, k_w20, k_w21, k_w22, k_b1, k_b2 = jax.random.split(key, 9)

    # Node features [N, F_in]
    x = jax.random.normal(k_x, (N, conf["num_features"]), jnp.float32)

    # Deterministic undirected graph: ring + a few chords (both directions added).
    ring_src = jnp.arange(N, dtype=jnp.int32)
    ring_dst = (ring_src + 1) % N
    chord_src = jnp.array([0, 2, 4, 6], dtype=jnp.int32)
    chord_dst = jnp.array([8, 10, 12, 14], dtype=jnp.int32)
    src = jnp.concatenate([ring_src, ring_dst, chord_src, chord_dst])
    dst = jnp.concatenate([ring_dst, ring_src, chord_dst, chord_src])
    edge_index = jnp.stack([src, dst], axis=0)                    # [2, E]
    a_dense = build_dense_adjacency(edge_index, N)

    # Deterministic parameter init (glorot-ish scaling; synthetic, not a checkpoint).
    F_in, H, C = conf["num_features"], conf["hidden_channels"], conf["num_classes"]
    s1 = 1.0 / jnp.sqrt(jnp.float32(F_in))
    s2 = 1.0 / jnp.sqrt(jnp.float32(H))
    w1 = jnp.stack([
        s1 * jax.random.normal(k_w10, (F_in, H), jnp.float32),
        s1 * jax.random.normal(k_w11, (F_in, H), jnp.float32),
        s1 * jax.random.normal(k_w12, (F_in, H), jnp.float32),
    ])                                                            # [K+1, F_in, H]
    w2 = jnp.stack([
        s2 * jax.random.normal(k_w20, (H, C), jnp.float32),
        s2 * jax.random.normal(k_w21, (H, C), jnp.float32),
        s2 * jax.random.normal(k_w22, (H, C), jnp.float32),
    ])                                                            # [K+1, H, C]
    b1 = 0.01 * jax.random.normal(k_b1, (1, H), jnp.float32)      # [1, H]
    b2 = 0.01 * jax.random.normal(k_b2, (1, C), jnp.float32)      # [1, C]

    ref = tagcn_reference(a_dense, x, w1, b1, w2, b2)

    # Dispatcher picks the resident fused kernel at this size.
    out = tagcn_forward(a_dense, x, w1, b1, w2, b2)
    # Also exercise the row-tiled / streamed path explicitly on the same graph.
    out_tiled = tagcn_forward_tiled(a_dense, x, w1, b1, w2, b2)
    jax.block_until_ready((out, out_tiled, ref))

    assert out.shape == (N, C) and out.dtype == jnp.float32
    assert out_tiled.shape == (N, C) and out_tiled.dtype == jnp.float32
    err_res = float(jnp.max(jnp.abs(out - ref)))
    err_til = float(jnp.max(jnp.abs(out_tiled - ref)))
    # bf16 MXU operands -> allow ~1e-2 absolute deviation vs the f32 reference.
    assert err_res < 5e-2, f"resident path error too large: {err_res}"
    assert err_til < 5e-2, f"tiled path error too large: {err_til}"
    print("KERNEL_OK")
</pallas_src>

<mosaic_0001>
module attributes {stable_mosaic.version = 11 : i64} {
  func.func @_tagcn_resident_kernel(%arg0: memref<128x128xbf16, #tpu.memory_space<vmem>>, %arg1: memref<128x1xf32, #tpu.memory_space<vmem>>, %arg2: memref<128x128xf32, #tpu.memory_space<vmem>>, %arg3: memref<3x128x128xbf16, #tpu.memory_space<vmem>>, %arg4: memref<1x128xf32, #tpu.memory_space<vmem>>, %arg5: memref<3x128x128xbf16, #tpu.memory_space<vmem>>, %arg6: memref<1x128xf32, #tpu.memory_space<vmem>>, %arg7: memref<128x128xf32, #tpu.memory_space<vmem>>) attributes {dimension_semantics = [], scalar_prefetch = 0 : i64, scratch_operands = 0 : i64, tpu.core_type = #tpu.core_type<tc>} {
    %c0 = arith.constant 0 : index
    %c0_0 = arith.constant 0 : index
    %0 = vector.load %arg0[%c0, %c0_0] : memref<128x128xbf16, #tpu.memory_space<vmem>>, vector<128x128xbf16>
    %c0_1 = arith.constant 0 : index
    %c0_2 = arith.constant 0 : index
    %1 = vector.load %arg1[%c0_1, %c0_2] : memref<128x1xf32, #tpu.memory_space<vmem>>, vector<128x1xf32>
    %c0_3 = arith.constant 0 : index
    %c0_4 = arith.constant 0 : index
    %2 = vector.load %arg2[%c0_3, %c0_4] : memref<128x128xf32, #tpu.memory_space<vmem>>, vector<128x128xf32>
    %3 = vector.broadcast %1 : vector<128x1xf32> to vector<128x128xf32>
    %4 = arith.mulf %3, %2 : vector<128x128xf32>
    %5 = arith.truncf %4 : vector<128x128xf32> to vector<128x128xbf16>
    %cst = arith.constant dense<0.000000e+00> : vector<128x128xf32>
    %6 = tpu.matmul %0, %5, %cst {dimension_numbers = #tpu.dot_dimension_numbers<[1], [0], [0], [1], [0, 0, 1, 1], [], []>} : vector<128x128xbf16>, vector<128x128xbf16>, vector<128x128xf32> -> vector<128x128xf32>
    %7 = vector.broadcast %1 : vector<128x1xf32> to vector<128x128xf32>
    %8 = arith.mulf %7, %6 : vector<128x128xf32>
    %9 = vector.broadcast %1 : vector<128x1xf32> to vector<128x128xf32>
    %10 = arith.mulf %9, %8 : vector<128x128xf32>
    %11 = arith.truncf %10 : vector<128x128xf32> to vector<128x128xbf16>
    %cst_5 = arith.constant dense<0.000000e+00> : vector<128x128xf32>
    %12 = tpu.matmul %0, %11, %cst_5 {dimension_numbers = #tpu.dot_dimension_numbers<[1], [0], [0], [1], [0, 0, 1, 1], [], []>} : vector<128x128xbf16>, vector<128x128xbf16>, vector<128x128xf32> -> vector<128x128xf32>
    %13 = vector.broadcast %1 : vector<128x1xf32> to vector<128x128xf32>
    %14 = arith.mulf %13, %12 : vector<128x128xf32>
    %15 = arith.truncf %2 : vector<128x128xf32> to vector<128x128xbf16>
    %c0_6 = arith.constant 0 : index
    %c0_7 = arith.constant 0 : index
    %c0_8 = arith.constant 0 : index
    %16 = vector.load %arg3[%c0_6, %c0_7, %c0_8] : memref<3x128x128xbf16, #tpu.memory_space<vmem>>, vector<1x128x128xbf16>
    %17 = vector.shape_cast %16 : vector<1x128x128xbf16> to vector<128x128xbf16>
    %cst_9 = arith.constant dense<0.000000e+00> : vector<128x128xf32>
    %18 = tpu.matmul %15, %17, %cst_9 {dimension_numbers = #tpu.dot_dimension_numbers<[1], [0], [0], [1], [0, 0, 1, 1], [], []>} : vector<128x128xbf16>, vector<128x128xbf16>, vector<128x128xf32> -> vector<128x128xf32>
    %19 = arith.truncf %8 : vector<128x128xf32> to vector<128x128xbf16>
    %c1 = arith.constant 1 : index
    %c0_10 = arith.constant 0 : index
    %c0_11 = arith.constant 0 : index
    %20 = vector.load %arg3[%c1, %c0_10, %c0_11] : memref<3x128x128xbf16, #tpu.memory_space<vmem>>, vector<1x128x128xbf16>
    %21 = vector.shape_cast %20 : vector<1x128x128xbf16> to vector<128x128xbf16>
    %cst_12 = arith.constant dense<0.000000e+00> : vector<128x128xf32>
    %22 = tpu.matmul %19, %21, %cst_12 {dimension_numbers = #tpu.dot_dimension_numbers<[1], [0], [0], [1], [0, 0, 1, 1], [], []>} : vector<128x128xbf16>, vector<128x128xbf16>, vector<128x128xf32> -> vector<128x128xf32>
    %23 = arith.addf %18, %22 : vector<128x128xf32>
    %24 = arith.truncf %14 : vector<128x128xf32> to vector<128x128xbf16>
    %c2 = arith.constant 2 : index
    %c0_13 = arith.constant 0 : index
    %c0_14 = arith.constant 0 : index
    %25 = vector.load %arg3[%c2, %c0_13, %c0_14] : memref<3x128x128xbf16, #tpu.memory_space<vmem>>, vector<1x128x128xbf16>
    %26 = vector.shape_cast %25 : vector<1x128x128xbf16> to vector<128x128xbf16>
    %cst_15 = arith.constant dense<0.000000e+00> : vector<128x128xf32>
    %27 = tpu.matmul %24, %26, %cst_15 {dimension_numbers = #tpu.dot_dimension_numbers<[1], [0], [0], [1], [0, 0, 1, 1], [], []>} : vector<128x128xbf16>, vector<128x128xbf16>, vector<128x128xf32> -> vector<128x128xf32>
    %28 = arith.addf %23, %27 : vector<128x128xf32>
    %c0_16 = arith.constant 0 : index
    %c0_17 = arith.constant 0 : index
    %29 = vector.load %arg4[%c0_16, %c0_17] : memref<1x128xf32, #tpu.memory_space<vmem>>, vector<1x128xf32>
    %30 = vector.broadcast %29 : vector<1x128xf32> to vector<128x128xf32>
    %31 = arith.addf %28, %30 : vector<128x128xf32>
    %cst_18 = arith.constant 0.000000e+00 : f32
    %32 = vector.broadcast %cst_18 : f32 to vector<128x128xf32>
    %33 = arith.maximumf %31, %32 : vector<128x128xf32>
    %34 = vector.broadcast %1 : vector<128x1xf32> to vector<128x128xf32>
    %35 = arith.mulf %34, %33 : vector<128x128xf32>
    %36 = arith.truncf %35 : vector<128x128xf32> to vector<128x128xbf16>
    %cst_19 = arith.constant dense<0.000000e+00> : vector<128x128xf32>
    %37 = tpu.matmul %0, %36, %cst_19 {dimension_numbers = #tpu.dot_dimension_numbers<[1], [0], [0], [1], [0, 0, 1, 1], [], []>} : vector<128x128xbf16>, vector<128x128xbf16>, vector<128x128xf32> -> vector<128x128xf32>
    %38 = vector.broadcast %1 : vector<128x1xf32> to vector<128x128xf32>
    %39 = arith.mulf %38, %37 : vector<128x128xf32>
    %40 = vector.broadcast %1 : vector<128x1xf32> to vector<128x128xf32>
    %41 = arith.mulf %40, %39 : vector<128x128xf32>
    %42 = arith.truncf %41 : vector<128x128xf32> to vector<128x128xbf16>
    %cst_20 = arith.constant dense<0.000000e+00> : vector<128x128xf32>
    %43 = tpu.matmul %0, %42, %cst_20 {dimension_numbers = #tpu.dot_dimension_numbers<[1], [0], [0], [1], [0, 0, 1, 1], [], []>} : vector<128x128xbf16>, vector<128x128xbf16>, vector<128x128xf32> -> vector<128x128xf32>
    %44 = vector.broadcast %1 : vector<128x1xf32> to vector<128x128xf32>
    %45 = arith.mulf %44, %43 : vector<128x128xf32>
    %46 = arith.truncf %33 : vector<128x128xf32> to vector<128x128xbf16>
    %c0_21 = arith.constant 0 : index
    %c0_22 = arith.constant 0 : index
    %c0_23 = arith.constant 0 : index
    %47 = vector.load %arg5[%c0_21, %c0_22, %c0_23] : memref<3x128x128xbf16, #tpu.memory_space<vmem>>, vector<1x128x128xbf16>
    %48 = vector.shape_cast %47 : vector<1x128x128xbf16> to vector<128x128xbf16>
    %cst_24 = arith.constant dense<0.000000e+00> : vector<128x128xf32>
    %49 = tpu.matmul %46, %48, %cst_24 {dimension_numbers = #tpu.dot_dimension_numbers<[1], [0], [0], [1], [0, 0, 1, 1], [], []>} : vector<128x128xbf16>, vector<128x128xbf16>, vector<128x128xf32> -> vector<128x128xf32>
    %50 = arith.truncf %39 : vector<128x128xf32> to vector<128x128xbf16>
    %c1_25 = arith.constant 1 : index
    %c0_26 = arith.constant 0 : index
    %c0_27 = arith.constant 0 : index
    %51 = vector.load %arg5[%c1_25, %c0_26, %c0_27] : memref<3x128x128xbf16, #tpu.memory_space<vmem>>, vector<1x128x128xbf16>
    %52 = vector.shape_cast %51 : vector<1x128x128xbf16> to vector<128x128xbf16>
    %cst_28 = arith.constant dense<0.000000e+00> : vector<128x128xf32>
    %53 = tpu.matmul %50, %52, %cst_28 {dimension_numbers = #tpu.dot_dimension_numbers<[1], [0], [0], [1], [0, 0, 1, 1], [], []>} : vector<128x128xbf16>, vector<128x128xbf16>, vector<128x128xf32> -> vector<128x128xf32>
    %54 = arith.addf %49, %53 : vector<128x128xf32>
    %55 = arith.truncf %45 : vector<128x128xf32> to vector<128x128xbf16>
    %c2_29 = arith.constant 2 : index
    %c0_30 = arith.constant 0 : index
    %c0_31 = arith.constant 0 : index
    %56 = vector.load %arg5[%c2_29, %c0_30, %c0_31] : memref<3x128x128xbf16, #tpu.memory_space<vmem>>, vector<1x128x128xbf16>
    %57 = vector.shape_cast %56 : vector<1x128x128xbf16> to vector<128x128xbf16>
    %cst_32 = arith.constant dense<0.000000e+00> : vector<128x128xf32>
    %58 = tpu.matmul %55, %57, %cst_32 {dimension_numbers = #tpu.dot_dimension_numbers<[1], [0], [0], [1], [0, 0, 1, 1], [], []>} : vector<128x128xbf16>, vector<128x128xbf16>, vector<128x128xf32> -> vector<128x128xf32>
    %59 = arith.addf %54, %58 : vector<128x128xf32>
    %c0_33 = arith.constant 0 : index
    %c0_34 = arith.constant 0 : index
    %60 = vector.load %arg6[%c0_33, %c0_34] : memref<1x128xf32, #tpu.memory_space<vmem>>, vector<1x128xf32>
    %61 = vector.broadcast %60 : vector<1x128xf32> to vector<128x128xf32>
    %62 = arith.addf %59, %61 : vector<128x128xf32>
    %c0_35 = arith.constant 0 : index
    %c0_36 = arith.constant 0 : index
    %63 = vector.load %arg7[%c0_35, %c0_36] : memref<128x128xf32, #tpu.memory_space<vmem>>, vector<128x128xf32>
    tpu.vector_store %arg7[%c0_35, %c0_36], %62 {strides = array<i32>} : memref<128x128xf32, #tpu.memory_space<vmem>>, vector<128x128xf32>,
    return
  }
}

</mosaic_0001>

<bundles_post_ra>
// kernel: tpu_custom_call.1
= control target key start
LH: loop header
LB: loop body
LE: loop exit
PB: predicated region body
PF: predicated region fallthrough
CT: control target
= control target key end

     0   :  { %12 = vsyncpa [#allocation3], 0  ;;  %s3246_s0 = inlined_call_operand.hbm [shape: bf16[128,128], index: 0, kind: input, shape index: {}]   ;;  %s3247_s1 = inlined_call_operand.vmem [shape: f32[128,1], index: 1, kind: input, shape index: {}]   ;;  %s3248_s2 = inlined_call_operand.vmem [shape: f32[128,128], index: 2, kind: input, shape index: {}]   ;;  %s3249_s3 = inlined_call_operand.hbm [shape: bf16[3,128,128], index: 3, kind: input, shape index: {}]   ;;  %s3250_s4 = inlined_call_operand.vmem [shape: f32[1,128], index: 4, kind: input, shape index: {}]   ;;  %s3251_s5 = inlined_call_operand.hbm [shape: bf16[3,128,128], index: 5, kind: input, shape index: {}]   ;;  %s3252_s6 = inlined_call_operand.vmem [shape: f32[1,128], index: 6, kind: input, shape index: {}]   ;;  %s3253_s7 = inlined_call_operand.hbm [shape: f32[128,128], index: 7, kind: output, shape index: {}]  }
   0x1   :  { %13 = vsyncpa [#allocation6], 0 }
   0x2   :  { %14 = vsyncpa [#allocation4], 0  ;;  %s2637_s24 = smov [#allocation5]   ;;  %s2638_s26 = smov [#allocation2]  }
   0x3   :  { %s36_s25 = sshll.u32 %s2637_s24, 4  ;;  %s20_s27 = sshll.u32 %s2638_s26, 4  ;;  %s37_s25 = int_to_ptr.vmem [resolvable:$true] %s36_s25  ;;  %s21_s27 = int_to_ptr.vmem [resolvable:$true] %s20_s27 }
   0x4   :  { %s2559_s28 = scalar_lea.vmem %s37_s25, 3072  ;;  %p2564_p1 = scmp.lt.s32.totalorder %s37_s25, %s37_s25 }
   0x5   :  { %p2560_p0 = scmp.ne.s32.totalorder %s37_s25, %s2559_s28  ;;  %p2565_p2 = scmp.lt.s32.totalorder %s2559_s28, %s2559_s28 }
   0x7   :  { %p2566_p3 = por %p2565_p2, %p2564_p1 }
   0x9   :  { %p2567_p4 = pnand %p2566_p3, %p2560_p0 }
   0xb   :  { %2570 = shalt.err (!%p2567_p4)
}
   0xc   :  { %s2639_s29 = smov 64   ;;  %s2640_s30 = smov 4  }
   0xd   :  { %42 = dma.hbm_to_vmem [thread:$0]  %s3249_s3, 3072, %s37_s25, [#allocation6], %s2639_s29, %s2639_s29, %s2640_s30  }
   0xe   :  { %s2579_s10 = scalar_lea.vmem %s21_s27, 1024  ;;  %p2584_p6 = scmp.lt.s32.totalorder %s21_s27, %s21_s27 }
   0xf   :  { %p2580_p5 = scmp.ne.s32.totalorder %s21_s27, %s2579_s10  ;;  %p2585_p7 = scmp.lt.s32.totalorder %s2579_s10, %s2579_s10 }
  0x11   :  { %p2586_p8 = por %p2585_p7, %p2584_p6 }
  0x13   :  { %p2587_p9 = pnand %p2586_p8, %p2580_p5 }
  0x15   :  { %2590 = shalt.err (!%p2587_p9)
}
  0x16   :  { %26 = dma.hbm_to_vmem [thread:$0]  %s3246_s0, 1024, %s21_s27, [#allocation3], %s2639_s29, %s2639_s29, %s2640_s30  }
  0x17   :  { %s2641_s13 = smov [#allocation7]  }
  0x18   :  { %s50_s14 = sshll.u32 %s2641_s13, 4  ;;  %s51_s14 = int_to_ptr.vmem [resolvable:$true] %s50_s14 }
  0x19   :  { %s2599_s15 = scalar_lea.vmem %s51_s14, 3072  ;;  %p2604_p11 = scmp.lt.s32.totalorder %s51_s14, %s51_s14 }
  0x1a   :  { %p2600_p10 = scmp.ne.s32.totalorder %s51_s14, %s2599_s15  ;;  %p2605_p12 = scmp.lt.s32.totalorder %s2599_s15, %s2599_s15 }
  0x1c   :  { %p2606_p13 = por %p2605_p12, %p2604_p11 }
  0x1e   :  { %p2607_p0 = pnand %p2606_p13, %p2600_p10 }
  0x20   :  { %2610 = shalt.err (!%p2607_p0)
}
  0x21   :  { %56 = dma.hbm_to_vmem [thread:$0]  %s3251_s5, 3072, %s51_s14, [#allocation6], %s2639_s29, %s2639_s29, %s2640_s30  }
  0x22   :  { %2631 = dma.done.wait [#allocation3], 1024  }
  0x23   :  { %2632 = vsyncadd [#allocation3], 4294966272 }
  0x24   :  { %2633 = dma.done.wait [#allocation6], 6144  }
  0x25   :  { %2634 = vsyncadd [#allocation6], 4294961152  ;;  %v2642_v0 = vmov 0   ;;  %v99_v1 = vld [vmem:[%s3247_s1 + $0x70] sm:$0xff]  ;;  %v97_v2 = vld [vmem:[%s3247_s1 + $0x60] sm:$0xff] }
  0x26   :  { %2487 = vset.pattern.permute.xlu1 %v2642_v0  ;;  %2486 = vset.pattern.permute.xlu0 %v2642_v0  ;;  %v100_v3 = vld [vmem:[%s3247_s1 + $0x78] sm:$0xff]  ;;  %v98_v4 = vld [vmem:[%s3247_s1 + $0x68] sm:$0xff]  ;;  %v95_v6 = vld [vmem:[%s3247_s1 + $0x50] sm:$0xff] }
  0x27   :  { %189 = vperm.xlu0 %2486, %v99_v1   ;;  %179 = vperm.xlu1 %2487, %v97_v2   ;;  %v96_v5 = vld [vmem:[%s3247_s1 + $0x58] sm:$0xff]  ;;  %v94_v7 = vld [vmem:[%s3247_s1 + $0x48] sm:$0xff]  ;;  %v93_v8 = vld [vmem:[%s3247_s1 + $0x40] sm:$0xff] }
  0x28   :  { %v92_v9 = vld [vmem:[%s3247_s1 + $0x38] sm:$0xff]  ;;  %v91_v10 = vld [vmem:[%s3247_s1 + $0x30] sm:$0xff]  ;;  %v90_v11 = vld [vmem:[%s3247_s1 + $0x28] sm:$0xff] }
  0x29   :  { %v89_v12 = vld [vmem:[%s3247_s1 + $0x20] sm:$0xff]  ;;  %v88_v13 = vld [vmem:[%s3247_s1 + $0x18] sm:$0xff]  ;;  %v87_v14 = vld [vmem:[%s3247_s1 + $0x10] sm:$0xff] }
  0x2a   :  { %v86_v15 = vld [vmem:[%s3247_s1 + $0x8] sm:$0xff]  ;;  %v85_v16 = vld [vmem:[%s3247_s1] sm:$0xff]  ;;  %v2754_v20 = vld [vmem:[%s3248_s2 + $0x70] sm:$0xff] }
  0x2b   :  { %194 = vperm.xlu0 %2486, %v100_v3   ;;  %184 = vperm.xlu1 %2487, %v98_v4   ;;  %v2743_v17 = vld [vmem:[#allocation2] sm:$0xff]   ;;  %3271 = vst [vmem:[#allocation15_spill] sm:$0xff] %v2754_v20  ;;  %v2759_v21 = vld [vmem:[%s3248_s2 + $0x78] sm:$0xff]  ;;  %v2769_v23 = vld [vmem:[%s3248_s2 + $0x68] sm:$0xff] }
  0x2c   :  { %3268 = vst [vmem:[#allocation12_spill] sm:$0xff] %v2743_v17  ;;  %2173 = vmatprep.mubr.bf16.mxu0 %v2743_v17  ;;  %2205 = vmatprep.mubr.bf16.mxu1 %v2743_v17  ;;  %3272 = vst [vmem:[#allocation16_spill] sm:$0xff] %v2759_v21  ;;  %v2764_v22 = vld [vmem:[%s3248_s2 + $0x60] sm:$0xff]  ;;  %v2786_v30 = vld [vmem:[%s3248_s2 + $0x50] sm:$0xff] }
  0x2d   :  { %v2791_v31 = vld [vmem:[%s3248_s2 + $0x58] sm:$0xff]  ;;  %v2804_v38 = vld [vmem:[%s3248_s2 + $0x40] sm:$0xff]  ;;  %v2809_v39 = vld [vmem:[%s3248_s2 + $0x48] sm:$0xff] }
  0x2e   :  { %v2822_v45 = vld [vmem:[%s3248_s2 + $0x30] sm:$0xff]  ;;  %v2827_v46 = vld [vmem:[%s3248_s2 + $0x38] sm:$0xff]  ;;  %v2840_v52 = vld [vmem:[%s3248_s2 + $0x20] sm:$0xff] }
  0x2f   :  { %174 = vperm.xlu1 %2487, %v96_v5   ;;  %169 = vperm.xlu0 %2486, %v95_v6   ;;  %v2845_v53 = vld [vmem:[%s3248_s2 + $0x28] sm:$0xff]  ;;  %v2858_v59 = vld [vmem:[%s3248_s2 + $0x10] sm:$0xff]  ;;  %v2863_v60 = vld [vmem:[%s3248_s2 + $0x18] sm:$0xff] }
  0x30   :  { %v2876_v2 = vld [vmem:[%s3248_s2] sm:$0xff]  ;;  %v2881_v3 = vld [vmem:[%s3248_s2 + $0x8] sm:$0xff] }
  0x33   :  { %164 = vperm.xlu1 %2487, %v94_v7   ;;  %159 = vperm.xlu0 %2486, %v93_v8  }
  0x37   :  { %154 = vperm.xlu1 %2487, %v92_v9   ;;  %149 = vperm.xlu0 %2486, %v91_v10   ;;  %v2496_v10 = vld [vmem:[#allocation5 + $0x78] sm:$0xff]  }
  0x3b   :  { %144 = vperm.xlu1 %2487, %v90_v11   ;;  %139 = vperm.xlu0 %2486, %v89_v12   ;;  %v2891_v11 = vld [vmem:[#allocation2 + $0x8] sm:$0xff]   ;;  %v2893_v12 = vld [vmem:[#allocation2 + $0x10] sm:$0xff]  }
  0x3f   :  { %134 = vperm.xlu1 %2487, %v88_v13   ;;  %129 = vperm.xlu0 %2486, %v87_v14   ;;  %v2497_v13 = vld [vmem:[#allocation5 + $0x70] sm:$0xff]   ;;  %v2498_v14 = vld [vmem:[#allocation5 + $0x68] sm:$0xff]  }
  0x43   :  { %124 = vperm.xlu1 %2487, %v86_v15   ;;  %119 = vperm.xlu0 %2486, %v85_v16   ;;  %v2897_v15 = vld [vmem:[#allocation2 + $0x18] sm:$0xff]   ;;  %v2899_v16 = vld [vmem:[#allocation2 + $0x20] sm:$0xff]  }
  0xa2   :  { %v2747_v18 = vpop.permute.xlu0 %189  ;;  %v2749_v19 = vpop.permute.xlu1 %179 }
  0xa3   :  { %3269 = vst [vmem:[#allocation13_spill] sm:$0xff] %v2747_v18  ;;  %3270 = vst [vmem:[#allocation14_spill] sm:$0xff] %v2749_v19  ;;  %v211_v26 = vmul.f32 %v2747_v18, %v2754_v20  ;;  %v209_v28 = vmul.f32 %v2749_v19, %v2764_v22 }
  0xa6   :  { %v2771_v24 = vpop.permute.xlu0 %194  ;;  %v2773_v25 = vpop.permute.xlu1 %184 }
  0xa7   :  { %v212_v27 = vmul.f32 %v2771_v24, %v2759_v21  ;;  %v210_v29 = vmul.f32 %v2773_v25, %v2769_v23 }
  0xa9   :  { %v220_v32 = vpack.c.bf16 %v212_v27, %v211_v26  ;;  %v219_v35 = vpack.c.bf16 %v210_v29, %v209_v28  ;;  %v2499_v26 = vld [vmem:[#allocation5 + $0x60] sm:$0xff]   ;;  %v2500_v27 = vld [vmem:[#allocation5 + $0x58] sm:$0xff]   ;;  %v2903_v28 = vld [vmem:[#allocation2 + $0x28] sm:$0xff]  }
  0xaa   :  { %v2793_v33 = vpop.permute.xlu1 %174  ;;  %v2795_v34 = vpop.permute.xlu0 %169  ;;  %v2905_v29 = vld [vmem:[#allocation2 + $0x30] sm:$0xff]  }
  0xab   :  { %2157 = vmatprep.subr.bf16.mxu0 %v220_v32  ;;  %v207_v36 = vmul.f32 %v2795_v34, %v2786_v30  ;;  %v208_v37 = vmul.f32 %v2793_v33, %v2791_v31 }
  0xac   :  { %2158 = vmatpush3.bf16.msra.mxu0 %v220_v32  ;;  %v2909_v32 = vld [vmem:[#allocation2 + $0x38] sm:$0xff]  }
  0xad   :  { %2159 = vmatprep.subr.bf16.mxu0 %v219_v35  ;;  %v218_v42 = vpack.c.bf16 %v208_v37, %v207_v36  ;;  %v2502_v36 = vld [vmem:[#allocation5 + $0x48] sm:$0xff]   ;;  %v2503_v37 = vld [vmem:[#allocation5 + $0x40] sm:$0xff]  }
  0xae   :  { %v2811_v40 = vpop.permute.xlu1 %164  ;;  %v2813_v41 = vpop.permute.xlu0 %159 }
  0xaf   :  { %v205_v43 = vmul.f32 %v2813_v41, %v2804_v38  ;;  %v206_v44 = vmul.f32 %v2811_v40, %v2809_v39 }
  0xb0   :  { %2160 = vmatpush3.bf16.msra.mxu0 %v219_v35  ;;  %v2501_v35 = vld [vmem:[#allocation5 + $0x50] sm:$0xff]  }
  0xb1   :  { %2161 = vmatprep.subr.bf16.mxu0 %v218_v42  ;;  %v217_v49 = vpack.c.bf16 %v206_v44, %v205_v43 }
  0xb2   :  { %v2829_v47 = vpop.permute.xlu1 %154  ;;  %v2831_v48 = vpop.permute.xlu0 %149 }
  0xb3   :  { %v203_v50 = vmul.f32 %v2831_v48, %v2822_v45  ;;  %v204_v51 = vmul.f32 %v2829_v47, %v2827_v46 }
  0xb4   :  { %2162 = vmatpush3.bf16.msra.mxu0 %v218_v42 }
  0xb5   :  { %2163 = vmatprep.subr.bf16.mxu0 %v217_v49  ;;  %v216_v56 = vpack.c.bf16 %v204_v51, %v203_v50 }
  0xb6   :  { %v2847_v54 = vpop.permute.xlu1 %144  ;;  %v2849_v55 = vpop.permute.xlu0 %139 }
  0xb7   :  { %v201_v57 = vmul.f32 %v2849_v55, %v2840_v52  ;;  %v202_v58 = vmul.f32 %v2847_v54, %v2845_v53 }
  0xb8   :  { %2164 = vmatpush3.bf16.msra.mxu0 %v217_v49 }
  0xb9   :  { %2165 = vmatprep.subr.bf16.mxu0 %v216_v56  ;;  %v215_v63 = vpack.c.bf16 %v202_v58, %v201_v57 }
  0xba   :  { %v2865_v61 = vpop.permute.xlu1 %134  ;;  %v2867_v62 = vpop.permute.xlu0 %129 }
  0xbb   :  { %v199_v0 = vmul.f32 %v2867_v62, %v2858_v59  ;;  %v200_v1 = vmul.f32 %v2865_v61, %v2863_v60 }
  0xbc   :  { %2166 = vmatpush3.bf16.msra.mxu0 %v216_v56 }
  0xbd   :  { %2167 = vmatprep.subr.bf16.mxu0 %v215_v63  ;;  %v214_v6 = vpack.c.bf16 %v200_v1, %v199_v0 }
  0xbe   :  { %v2883_v4 = vpop.permute.xlu1 %124  ;;  %v2885_v5 = vpop.permute.xlu0 %119 }
  0xbf   :  { %v197_v7 = vmul.f32 %v2885_v5, %v2876_v2  ;;  %v198_v8 = vmul.f32 %v2883_v4, %v2881_v3 }
  0xc0   :  { %2168 = vmatpush3.bf16.msra.mxu0 %v215_v63 }
  0xc1   :  { %2169 = vmatprep.subr.bf16.mxu0 %v214_v6  ;;  %v213_v9 = vpack.c.bf16 %v198_v8, %v197_v7 }
  0xc4   :  { %2170 = vmatpush3.bf16.msra.mxu0 %v214_v6 }
  0xc5   :  { %2171 = vmatprep.subr.bf16.mxu0 %v213_v9 }
  0xc8   :  { %2172 = vmatpush3.bf16.msra.mxu0 %v213_v9 }
  0xc9   :  { %2221 = vmatprep.subr.bf16.mxu0 %v2496_v10 }
  0xcb   :  { %2174 = vmatmul.mubr.bf16.vlgmr.msra.gmra.mxu0 %v2891_v11 }
  0xcc   :  { %2177 = vmatprep.mubr.bf16.mxu0 %v2893_v12  ;;  %2222 = vmatpush3.bf16.msra.mxu0 %v2496_v10 }
  0xcd   :  { %2223 = vmatprep.subr.bf16.mxu0 %v2497_v13 }
  0xd0   :  { %2224 = vmatpush3.bf16.msra.mxu0 %v2497_v13 }
  0xd1   :  { %2225 = vmatprep.subr.bf16.mxu0 %v2498_v14 }
  0xd3   :  { %2178 = vmatmul.mubr.bf16.gmra.mxu0 %v2897_v15 }
  0xd4   :  { %2181 = vmatprep.mubr.bf16.mxu0 %v2899_v16  ;;  %2226 = vmatpush3.bf16.msra.mxu0 %v2498_v14 }
  0xd5   :  { %2227 = vmatprep.subr.bf16.mxu0 %v2499_v26 }
  0xd8   :  { %2228 = vmatpush3.bf16.msra.mxu0 %v2499_v26 }
  0xd9   :  { %2229 = vmatprep.subr.bf16.mxu0 %v2500_v27 }
  0xdb   :  { %2182 = vmatmul.mubr.bf16.gmra.mxu0 %v2903_v28 }
  0xdc   :  { %2185 = vmatprep.mubr.bf16.mxu0 %v2905_v29  ;;  %2230 = vmatpush3.bf16.msra.mxu0 %v2500_v27 }
  0xdd   :  { %2231 = vmatprep.subr.bf16.mxu0 %v2501_v35 }
  0xe0   :  { %2232 = vmatpush3.bf16.msra.mxu0 %v2501_v35 }
  0xe1   :  { %2233 = vmatprep.subr.bf16.mxu0 %v2502_v36 }
  0xe3   :  { %2186 = vmatmul.mubr.bf16.gmra.mxu0 %v2909_v32 }
  0xe4   :  { %2234 = vmatpush3.bf16.msra.mxu0 %v2502_v36 }
  0xe5   :  { %2235 = vmatprep.subr.bf16.mxu0 %v2503_v37 }
  0xe8   :  { %2236 = vmatpush3.bf16.msra.mxu0 %v2503_v37 }
 0x18b   :  { %v2175_v42 = vpop.f32.mrf.mxu0 }
 0x18c   :  { %v2922_v57 = vmul.f32 %v2175_v42, %v2867_v62 }
 0x18d   :  { %v303_v43 = vpop.f32.mrf.mxu0 }
 0x18e   :  { %v2916_v51 = vmul.f32 %v303_v43, %v2885_v5 }
 0x18f   :  { %v2176_v44 = vpop.f32.mrf.mxu0 }
 0x190   :  { %v2913_v49 = vmul.f32 %v2176_v44, %v2865_v61 }
 0x191   :  { %v306_v50 = vpop.f32.mrf.mxu0 }
 0x192   :  { %v2919_v56 = vmul.f32 %v306_v50, %v2883_v4  ;;  %v544_v0 = vpack.c.bf16 %v2913_v49, %v2922_v57 }
 0x193   :  { %v2179_v58 = vpop.f32.mrf.mxu0 }
 0x194   :  { %v543_v63 = vpack.c.bf16 %v2919_v56, %v2916_v51  ;;  %v372_v13 = vmul.f32 %v2179_v58, %v2831_v48 }
 0x195   :  { %v319_v1 = vpop.f32.mrf.mxu0 }
 0x196   :  { %2237 = vmatprep.mubr.bf16.mxu0 %v543_v63  ;;  %v370_v9 = vmul.f32 %v319_v1, %v2849_v55 }
 0x197   :  { %v2180_v6 = vpop.f32.mrf.mxu0  ;;  %2238 = vmatmul.mubr.bf16.vlgmr.msra.gmra.mxu0 %v544_v0 }
 0x198   :  { %v373_v7 = vmul.f32 %v2180_v6, %v2829_v47 }
 0x199   :  { %v322_v8 = vpop.f32.mrf.mxu0 }
 0x19a   :  { %v371_v10 = vmul.f32 %v322_v8, %v2847_v54  ;;  %v546_v27 = vpack.c.bf16 %v373_v7, %v372_v13 }
 0x19b   :  { %v2183_v14 = vpop.f32.mrf.mxu0 }
 0x19c   :  { %v545_v26 = vpack.c.bf16 %v371_v10, %v370_v9  ;;  %v376_v50 = vmul.f32 %v2183_v14, %v2795_v34 }
 0x19d   :  { %v335_v35 = vpop.f32.mrf.mxu0 }
 0x19e   :  { %2241 = vmatprep.mubr.bf16.mxu0 %v545_v26  ;;  %v374_v43 = vmul.f32 %v335_v35, %v2813_v41 }
 0x19f   :  { %v2184_v36 = vpop.f32.mrf.mxu0  ;;  %2242 = vmatmul.mubr.bf16.gmra.mxu0 %v546_v27 }
 0x1a0   :  { %v377_v37 = vmul.f32 %v2184_v36, %v2793_v33 }
 0x1a1   :  { %v338_v42 = vpop.f32.mrf.mxu0 }
 0x1a2   :  { %v375_v44 = vmul.f32 %v338_v42, %v2811_v40  ;;  %v548_v1 = vpack.c.bf16 %v377_v37, %v376_v50 }
 0x1a3   :  { %v2187_v63 = vpop.f32.mrf.mxu0 }
 0x1a4   :  { %v547_v0 = vpack.c.bf16 %v375_v44, %v374_v43  ;;  %v380_v6 = vmul.f32 %v2187_v63, %v2747_v18 }
 0x1a5   :  { %v351_v58 = vpop.f32.mrf.mxu0 }
 0x1a6   :  { %2245 = vmatprep.mubr.bf16.mxu0 %v547_v0  ;;  %v378_v26 = vmul.f32 %v351_v58, %v2749_v19  ;;  %v396_v35 = vmul.f32 %v380_v6, %v2747_v18  ;;  %v391_v18 = vmul.f32 %v375_v44, %v2811_v40  ;;  %v385_v44 = vmul.f32 %v2913_v49, %v2865_v61  ;;  %v2505_v49 = vld [vmem:[#allocation5 + $0x30] sm:$0xff]  }
 0x1a7   :  { %v2188_v8 = vpop.f32.mrf.mxu0  ;;  %2246 = vmatmul.mubr.bf16.gmra.mxu0 %v548_v1  ;;  %v393_v1 = vmul.f32 %v377_v37, %v2793_v33  ;;  %v388_v37 = vmul.f32 %v372_v13, %v2831_v48  ;;  %v2504_v13 = vld [vmem:[#allocation5 + $0x38] sm:$0xff]  }
 0x1a8   :  { %v381_v27 = vmul.f32 %v2188_v8, %v2771_v24  ;;  %v394_v17 = vmul.f32 %v378_v26, %v2749_v19  ;;  %v392_v8 = vmul.f32 %v376_v50, %v2795_v34  ;;  %v390_v19 = vmul.f32 %v374_v43, %v2813_v41  ;;  %v2509_v43 = vld [vmem:[#allocation5 + $0x10] sm:$0xff]  }
 0x1a9   :  { %v354_v36 = vpop.f32.mrf.mxu0 }
 0x1aa   :  { %v397_v42 = vmul.f32 %v381_v27, %v2771_v24  ;;  %v379_v14 = vmul.f32 %v354_v36, %v2773_v25  ;;  %v550_v0 = vpack.c.bf16 %v381_v27, %v380_v6  ;;  %v403_v36 = vpack.c.bf16 %v393_v1, %v392_v8  ;;  %v2510_v27 = vld [vmem:[#allocation5 + $0x8] sm:$0xff]   ;;  %v2513_v1 = vld [vmem:[#allocation5 + $0xb0] sm:$0xff]  }
 0x1ab   :  { %v402_v6 = vpack.c.bf16 %v391_v18, %v390_v19  ;;  %v383_v18 = vmul.f32 %v2919_v56, %v2883_v4  ;;  %v2506_v56 = vld [vmem:[#allocation5 + $0x28] sm:$0xff]  }
 0x1ac   :  { %v395_v21 = vmul.f32 %v379_v14, %v2773_v25  ;;  %v549_v20 = vpack.c.bf16 %v379_v14, %v378_v26  ;;  %v405_v63 = vpack.c.bf16 %v397_v42, %v396_v35  ;;  %v389_v26 = vmul.f32 %v373_v7, %v2829_v47  ;;  %v2511_v42 = vld [vmem:[#allocation5] sm:$0xff]  }
 0x1ad   :  { %v384_v7 = vmul.f32 %v2922_v57, %v2867_v62  ;;  %v2507_v57 = vld [vmem:[#allocation5 + $0x20] sm:$0xff]   ;;  %v519_v35 = vpack.c.bf16 %v2881_v3, %v2876_v2  ;;  %v520_v14 = vpack.c.bf16 %v2863_v60, %v2858_v59  ;;  %v523_v2 = vpack.c.bf16 %v2809_v39, %v2804_v38  ;;  %v2512_v3 = vld [vmem:[#allocation5 + $0xb8] sm:$0xff]   ;;  %v2514_v59 = vld [vmem:[#allocation5 + $0xa8] sm:$0xff]  }
 0x1ae   :  { %2189 = vmatprep.subr.bf16.mxu1 %v405_v63  ;;  %2249 = vmatprep.mubr.bf16.mxu0 %v549_v20  ;;  %v404_v58 = vpack.c.bf16 %v395_v21, %v394_v17  ;;  %v387_v17 = vmul.f32 %v371_v10, %v2847_v54  ;;  %v401_v20 = vpack.c.bf16 %v389_v26, %v388_v37  ;;  %v2516_v38 = vld [vmem:[#allocation5 + $0x98] sm:$0xff]  }
 0x1af   :  { %2190 = vmatpush3.bf16.msra.mxu1 %v405_v63  ;;  %2250 = vmatmul.mubr.bf16.gmra.mxu0 %v550_v0  ;;  %v386_v21 = vmul.f32 %v370_v9, %v2849_v55  ;;  %v399_v19 = vpack.c.bf16 %v385_v44, %v384_v7  ;;  %v382_v10 = vmul.f32 %v2916_v51, %v2885_v5  ;;  %v2508_v51 = vld [vmem:[#allocation5 + $0x18] sm:$0xff]  }
 0x1b0   :  { %2191 = vmatprep.subr.bf16.mxu1 %v404_v58  ;;  %v521_v63 = vpack.c.bf16 %v2845_v53, %v2840_v52  ;;  %v522_v0 = vpack.c.bf16 %v2827_v46, %v2822_v45  ;;  %2285 = vmatprep.subr.bf16.mxu0 %v2512_v3  ;;  %v524_v60 = vpack.c.bf16 %v2791_v31, %v2786_v30  ;;  %v2515_v45 = vld [vmem:[#allocation5 + $0xa0] sm:$0xff]   ;;  %v3273_v39 = vld [vmem:[#allocation15_spill] sm:$0xff]  ;;  %v2517_v30 = vld [vmem:[#allocation5 + $0x90] sm:$0xff]  }
 0x1b1   :  { %v400_v50 = vpack.c.bf16 %v387_v17, %v386_v21  ;;  %v398_v9 = vpack.c.bf16 %v383_v18, %v382_v10  ;;  %2286 = vmatpush3.bf16.msra.mxu0 %v2512_v3  ;;  %v525_v52 = vpack.c.bf16 %v2769_v23, %v2764_v22  ;;  %v3274_v46 = vld [vmem:[#allocation16_spill] sm:$0xff]  ;;  %v2518_v22 = vld [vmem:[#allocation5 + $0x88] sm:$0xff]  }
 0x1b2   :  { %2287 = vmatprep.subr.bf16.mxu0 %v2513_v1  ;;  %v526_v53 = vpack.c.bf16 %v3274_v46, %v3273_v39  ;;  %v2519_v23 = vld [vmem:[#allocation5 + $0x80] sm:$0xff]  }
 0x1b3   :  { %2192 = vmatpush3.bf16.msra.mxu1 %v404_v58  ;;  %v3275_v58 = vld [vmem:[#allocation12_spill] sm:$0xff] }
 0x1b4   :  { %2193 = vmatprep.subr.bf16.mxu1 %v403_v36 }
 0x1b5   :  { %2288 = vmatpush3.bf16.msra.mxu0 %v2513_v1 }
 0x1b6   :  { %2289 = vmatprep.subr.bf16.mxu0 %v2514_v59 }
 0x1b7   :  { %2194 = vmatpush3.bf16.msra.mxu1 %v403_v36 }
 0x1b8   :  { %2195 = vmatprep.subr.bf16.mxu1 %v402_v6 }
 0x1b9   :  { %2290 = vmatpush3.bf16.msra.mxu0 %v2514_v59 }
 0x1ba   :  { %2291 = vmatprep.subr.bf16.mxu0 %v2515_v45 }
 0x1bb   :  { %2196 = vmatpush3.bf16.msra.mxu1 %v402_v6 }
 0x1bc   :  { %2197 = vmatprep.subr.bf16.mxu1 %v401_v20 }
 0x1bd   :  { %2292 = vmatpush3.bf16.msra.mxu0 %v2515_v45 }
 0x1be   :  { %2293 = vmatprep.subr.bf16.mxu0 %v2516_v38 }
 0x1bf   :  { %2198 = vmatpush3.bf16.msra.mxu1 %v401_v20 }
 0x1c0   :  { %2199 = vmatprep.subr.bf16.mxu1 %v400_v50 }
 0x1c1   :  { %2294 = vmatpush3.bf16.msra.mxu0 %v2516_v38  ;;  %v3276_v38 = vld [vmem:[#allocation14_spill] sm:$0xff] }
 0x1c2   :  { %2295 = vmatprep.subr.bf16.mxu0 %v2517_v30 }
 0x1c3   :  { %2200 = vmatpush3.bf16.msra.mxu1 %v400_v50 }
 0x1c4   :  { %2201 = vmatprep.subr.bf16.mxu1 %v399_v19 }
 0x1c5   :  { %2296 = vmatpush3.bf16.msra.mxu0 %v2517_v30 }
 0x1c6   :  { %2297 = vmatprep.subr.bf16.mxu0 %v2518_v22 }
 0x1c7   :  { %2202 = vmatpush3.bf16.msra.mxu1 %v399_v19 }
 0x1c8   :  { %2203 = vmatprep.subr.bf16.mxu1 %v398_v9 }
 0x1c9   :  { %2298 = vmatpush3.bf16.msra.mxu0 %v2518_v22 }
 0x1ca   :  { %2299 = vmatprep.subr.bf16.mxu0 %v2519_v23 }
 0x1cb   :  { %2204 = vmatpush3.bf16.msra.mxu1 %v398_v9 }
 0x1cc   :  { %2253 = vmatprep.subr.bf16.mxu1 %v2504_v13 }
 0x1cd   :  { %2300 = vmatpush3.bf16.msra.mxu0 %v2519_v23 }
 0x1ce   :  { %2206 = vmatmul.mubr.bf16.vlgmr.msra.gmra.mxu1 %v2891_v11 }
 0x1cf   :  { %2254 = vmatpush3.bf16.msra.mxu1 %v2504_v13  ;;  %2209 = vmatprep.mubr.bf16.mxu1 %v2893_v12 }
 0x1d0   :  { %2255 = vmatprep.subr.bf16.mxu1 %v2505_v49 }
 0x1d3   :  { %2256 = vmatpush3.bf16.msra.mxu1 %v2505_v49 }
 0x1d4   :  { %2257 = vmatprep.subr.bf16.mxu1 %v2506_v56 }
 0x1d6   :  { %2210 = vmatmul.mubr.bf16.gmra.mxu1 %v2897_v15 }
 0x1d7   :  { %2258 = vmatpush3.bf16.msra.mxu1 %v2506_v56  ;;  %2213 = vmatprep.mubr.bf16.mxu1 %v2899_v16 }
 0x1d8   :  { %2259 = vmatprep.subr.bf16.mxu1 %v2507_v57 }
 0x1db   :  { %2260 = vmatpush3.bf16.msra.mxu1 %v2507_v57 }
 0x1dc   :  { %2261 = vmatprep.subr.bf16.mxu1 %v2508_v51 }
 0x1de   :  { %2214 = vmatmul.mubr.bf16.gmra.mxu1 %v2903_v28 }
 0x1df   :  { %2262 = vmatpush3.bf16.msra.mxu1 %v2508_v51  ;;  %2217 = vmatprep.mubr.bf16.mxu1 %v2905_v29 }
 0x1e0   :  { %2263 = vmatprep.subr.bf16.mxu1 %v2509_v43 }
 0x1e3   :  { %2264 = vmatpush3.bf16.msra.mxu1 %v2509_v43 }
 0x1e4   :  { %2265 = vmatprep.subr.bf16.mxu1 %v2510_v27 }
 0x1e6   :  { %2218 = vmatmul.mubr.bf16.gmra.mxu1 %v2909_v32 }
 0x1e7   :  { %2266 = vmatpush3.bf16.msra.mxu1 %v2510_v27  ;;  %2269 = vmatprep.mubr.bf16.mxu1 %v519_v35 }
 0x1e8   :  { %2267 = vmatprep.subr.bf16.mxu1 %v2511_v42 }
 0x1eb   :  { %2268 = vmatpush3.bf16.msra.mxu1 %v2511_v42 }
 0x1ee   :  { %2270 = vmatmul.mubr.bf16.vlgmr.msra.gmra.mxu1 %v520_v14 }
 0x1ef   :  { %2273 = vmatprep.mubr.bf16.mxu1 %v521_v63 }
 0x1f6   :  { %2274 = vmatmul.mubr.bf16.gmra.mxu1 %v522_v0 }
 0x1f7   :  { %2277 = vmatprep.mubr.bf16.mxu1 %v523_v2 }
 0x1fe   :  { %2278 = vmatmul.mubr.bf16.gmra.mxu1 %v524_v60 }
 0x1ff   :  { %2281 = vmatprep.mubr.bf16.mxu1 %v525_v52 }
 0x206   :  { %2282 = vmatmul.mubr.bf16.gmra.mxu1 %v526_v53  ;;  %v3277_v53 = vld [vmem:[#allocation13_spill] sm:$0xff] }
 0x207   :  { %2333 = vmatprep.mubr.bf16.mxu1 %v3275_v58 }
 0x28e   :  { %v2207_v31 = vpop.f32.mrf.mxu1 }
 0x28f   :  { %v505_v20 = vmul.f32 %v2207_v31, %v2867_v62  ;;  %v2239_v31 = vpop.f32.mrf.mxu0 }
 0x290   :  { %v440_v8 = vpop.f32.mrf.mxu1 }
 0x291   :  { %v503_v37 = vmul.f32 %v440_v8, %v2885_v5  ;;  %v650_v8 = vpop.f32.mrf.mxu0 }
 0x292   :  { %v2208_v36 = vpop.f32.mrf.mxu1 }
 0x293   :  { %v506_v26 = vmul.f32 %v2208_v36, %v2865_v61  ;;  %v2240_v36 = vpop.f32.mrf.mxu0 }
 0x294   :  { %v443_v6 = vpop.f32.mrf.mxu1 }
 0x295   :  { %v504_v17 = vmul.f32 %v443_v6, %v2883_v4  ;;  %v859_v50 = vpack.c.bf16 %v506_v26, %v505_v20  ;;  %v653_v26 = vpop.f32.mrf.mxu0 }
 0x296   :  { %v2211_v21 = vpop.f32.mrf.mxu1 }
 0x297   :  { %v858_v44 = vpack.c.bf16 %v504_v17, %v503_v37  ;;  %v509_v49 = vmul.f32 %v2211_v21, %v2831_v48  ;;  %v2243_v6 = vpop.f32.mrf.mxu0 }
 0x298   :  { %v456_v7 = vpop.f32.mrf.mxu1 }
 0x299   :  { %2301 = vmatprep.mubr.bf16.mxu0 %v858_v44  ;;  %v507_v9 = vmul.f32 %v456_v7, %v2849_v55  ;;  %v666_v37 = vpop.f32.mrf.mxu0 }
 0x29a   :  { %v2212_v18 = vpop.f32.mrf.mxu1  ;;  %2302 = vmatmul.mubr.bf16.vlgmr.msra.gmra.mxu0 %v859_v50 }
 0x29b   :  { %v510_v19 = vmul.f32 %v2212_v18, %v2829_v47  ;;  %v2244_v17 = vpop.f32.mrf.mxu0 }
 0x29c   :  { %v459_v10 = vpop.f32.mrf.mxu1 }
 0x29d   :  { %v508_v13 = vmul.f32 %v459_v10, %v2847_v54  ;;  %v861_v51 = vpack.c.bf16 %v510_v19, %v509_v49  ;;  %v669_v20 = vpop.f32.mrf.mxu0 }
 0x29e   :  { %v2215_v56 = vpop.f32.mrf.mxu1 }
 0x29f   :  { %v860_v57 = vpack.c.bf16 %v508_v13, %v507_v9  ;;  %v513_v0 = vmul.f32 %v2215_v56, %v2795_v34  ;;  %v2247_v44 = vpop.f32.mrf.mxu0 }
 0x2a0   :  { %v472_v43 = vpop.f32.mrf.mxu1 }
 0x2a1   :  { %2305 = vmatprep.mubr.bf16.mxu0 %v860_v57  ;;  %v511_v14 = vmul.f32 %v472_v43, %v2813_v41  ;;  %v682_v7 = vpop.f32.mrf.mxu0 }
 0x2a2   :  { %v2216_v27 = vpop.f32.mrf.mxu1  ;;  %2306 = vmatmul.mubr.bf16.gmra.mxu0 %v861_v51 }
 0x2a3   :  { %v514_v35 = vmul.f32 %v2216_v27, %v2793_v33  ;;  %v3001_v19 = vpop.f32.mrf.mxu0 }
 0x2a4   :  { %v475_v42 = vpop.f32.mrf.mxu1 }
 0x2a5   :  { %v512_v63 = vmul.f32 %v475_v42, %v2811_v40  ;;  %v863_v1 = vpack.c.bf16 %v514_v35, %v513_v0  ;;  %v3003_v9 = vpop.f32.mrf.mxu0 }
 0x2a6   :  { %v2219_v2 = vpop.f32.mrf.mxu1 }
 0x2a7   :  { %v862_v3 = vpack.c.bf16 %v512_v63, %v511_v14  ;;  %v517_v30 = vmul.f32 %v2219_v2, %v3277_v53 }
 0x2a8   :  { %v488_v59 = vpop.f32.mrf.mxu1 }
 0x2a9   :  { %2309 = vmatprep.mubr.bf16.mxu0 %v862_v3  ;;  %v515_v39 = vmul.f32 %v488_v59, %v3276_v38  ;;  %v3016_v3 = vld [vmem:[%s3250_s4] ss:$0 sm:$0xff] }
 0x2aa   :  { %v2220_v60 = vpop.f32.mrf.mxu1  ;;  %2310 = vmatmul.mubr.bf16.gmra.mxu0 %v863_v1 }
 0x2ab   :  { %v518_v52 = vmul.f32 %v2220_v60, %v2771_v24 }
 0x2ac   :  { %v491_v45 = vpop.f32.mrf.mxu1 }
 0x2ad   :  { %v516_v46 = vmul.f32 %v491_v45, %v2773_v25  ;;  %v865_v23 = vpack.c.bf16 %v518_v52, %v517_v30 }
 0x2ae   :  { %v2271_v21 = vpop.f32.mrf.mxu1 }
 0x2af   :  { %v864_v22 = vpack.c.bf16 %v516_v46, %v515_v39  ;;  %v804_v42 = vadd.f32 %v2271_v21, %v2239_v31 }
 0x2b0   :  { %v795_v50 = vpop.f32.mrf.mxu1 }
 0x2b1   :  { %2313 = vmatprep.mubr.bf16.mxu0 %v864_v22  ;;  %v796_v0 = vadd.f32 %v795_v50, %v650_v8 }
 0x2b2   :  { %2314 = vmatmul.mubr.bf16.gmra.mxu0 %v865_v23  ;;  %v2272_v18 = vpop.f32.mrf.mxu1 }
 0x2b3   :  { %2365 = vmatprep.mubr.bf16.mxu0 %v3275_v58  ;;  %v3005_v58 = vpop.f32.mrf.mxu0  ;;  %v807_v59 = vadd.f32 %v2272_v18, %v2240_v36 }
 0x2b4   :  { %v798_v10 = vpop.f32.mrf.mxu1 }
 0x2b5   :  { %v3007_v56 = vpop.f32.mrf.mxu0  ;;  %v799_v45 = vadd.f32 %v798_v10, %v653_v26 }
 0x2b6   :  { %v2275_v13 = vpop.f32.mrf.mxu1 }
 0x2b7   :  { %v3009_v51 = vpop.f32.mrf.mxu0  ;;  %v820_v8 = vadd.f32 %v2275_v13, %v2243_v6 }
 0x2b8   :  { %v811_v49 = vpop.f32.mrf.mxu1 }
 0x2b9   :  { %v3011_v27 = vpop.f32.mrf.mxu0  ;;  %v812_v10 = vadd.f32 %v811_v49, %v666_v37 }
 0x2ba   :  { %v2276_v57 = vpop.f32.mrf.mxu1 }
 0x2bc   :  { %v814_v43 = vpop.f32.mrf.mxu1 }
 0x2be   :  { %v2279_v35 = vpop.f32.mrf.mxu1 }
 0x2c0   :  { %v827_v2 = vpop.f32.mrf.mxu1 }
 0x2c2   :  { %v2280_v30 = vpop.f32.mrf.mxu1 }
 0x35a   :  { %v2303_v14 = vpop.f32.mrf.mxu0 }
 0x35b   :  { %v1030_v63 = vadd.f32 %v2303_v14, %v804_v42  ;;  %v830_v42 = vpop.f32.mrf.mxu1 }
 0x35c   :  { %v965_v1 = vpop.f32.mrf.mxu0 }
 0x35d   :  { %v1028_v60 = vadd.f32 %v965_v1, %v796_v0  ;;  %v3019_v39 = vadd.f32 %v3016_v3, %v1030_v63  ;;  %v823_v0 = vadd.f32 %v2276_v57, %v2244_v17 }
 0x35e   :  { %v2304_v52 = vpop.f32.mrf.mxu0 }
 0x35f   :  { %v1031_v46 = vadd.f32 %v2304_v52, %v807_v59  ;;  %v3025_v21 = vadd.f32 %v3016_v3, %v1028_v60  ;;  %v3264_v36 = vmax.f32 %v3019_v39, 0.0  ;;  %v815_v52 = vadd.f32 %v814_v43, %v669_v20 }
 0x360   :  { %v968_v22 = vpop.f32.mrf.mxu0 }
 0x361   :  { %v3022_v23 = vadd.f32 %v3016_v3, %v1031_v46  ;;  %v1029_v31 = vadd.f32 %v968_v22, %v799_v45  ;;  %v3262_v1 = vmax.f32 %v3025_v21, 0.0  ;;  %v2283_v46 = vpop.f32.mrf.mxu1 }
 0x362   :  { %v2307_v50 = vpop.f32.mrf.mxu0 }
 0x363   :  { %v3265_v18 = vmax.f32 %v3022_v23, 0.0  ;;  %v3030_v26 = vadd.f32 %v3016_v3, %v1029_v31  ;;  %v1034_v14 = vadd.f32 %v2307_v50, %v820_v8  ;;  %v836_v31 = vadd.f32 %v2279_v35, %v2247_v44 }
 0x364   :  { %v981_v63 = vpop.f32.mrf.mxu0 }
 0x365   :  { %v3036_v6 = vpack.c.bf16 %v3265_v18, %v3264_v36  ;;  %v3263_v13 = vmax.f32 %v3030_v26, 0.0  ;;  %v1032_v59 = vadd.f32 %v981_v63, %v812_v10  ;;  %v3041_v37 = vadd.f32 %v3016_v3, %v1034_v14  ;;  %v843_v14 = vpop.f32.mrf.mxu1 }
 0x366   :  { %v2308_v60 = vpop.f32.mrf.mxu0  ;;  %v828_v10 = vadd.f32 %v827_v2, %v682_v7  ;;  %v831_v7 = vadd.f32 %v830_v42, %v3003_v9  ;;  %v844_v9 = vadd.f32 %v843_v14, %v3007_v56 }
 0x367   :  { %v1035_v45 = vadd.f32 %v2308_v60, %v823_v0  ;;  %v3047_v17 = vpack.c.bf16 %v3263_v13, %v3262_v1  ;;  %v3053_v8 = vadd.f32 %v3016_v3, %v1032_v59  ;;  %v1073_v63 = vmax.f32 %v3041_v37, 0.0 }
 0x368   :  { %v984_v49 = vpop.f32.mrf.mxu0  ;;  %v3281_v37 = vmax.f32 %v3019_v39, 0.0  ;;  %v2521_v39 = vld [vmem:[#allocation7 + $0x70] sm:$0xff]  }
 0x369   :  { %v3050_v57 = vadd.f32 %v3016_v3, %v1035_v45  ;;  %v1033_v22 = vadd.f32 %v984_v49, %v815_v52  ;;  %v839_v45 = vadd.f32 %v2280_v30, %v3001_v19  ;;  %v3266_v44 = vmax.f32 %v3053_v8, 0.0 }
 0x36a   :  { %v2311_v20 = vpop.f32.mrf.mxu0  ;;  %v852_v30 = vadd.f32 %v2283_v46, %v3005_v58 }
 0x36b   :  { %v1074_v43 = vmax.f32 %v3050_v57, 0.0  ;;  %v3057_v50 = vadd.f32 %v3016_v3, %v1033_v22  ;;  %v1038_v0 = vadd.f32 %v2311_v20, %v836_v31  ;;  %v2284_v22 = vpop.f32.mrf.mxu1  ;;  %v3280_v57 = vmax.f32 %v3022_v23, 0.0 }
 0x36c   :  { %v997_v60 = vpop.f32.mrf.mxu0 }
 0x36d   :  { %v3267_v52 = vmax.f32 %v3057_v50, 0.0  ;;  %v1036_v35 = vadd.f32 %v997_v60, %v828_v10  ;;  %v3067_v49 = vpack.c.bf16 %v1074_v43, %v1073_v63  ;;  %v1061_v31 = vadd.f32 %v3016_v3, %v1038_v0 }
 0x36e   :  { %v2312_v59 = vpop.f32.mrf.mxu0 }
 0x36f   :  { %v1039_v2 = vadd.f32 %v2312_v59, %v839_v45  ;;  %v3075_v19 = vpack.c.bf16 %v3267_v52, %v3266_v44  ;;  %v1059_v1 = vadd.f32 %v3016_v3, %v1036_v35  ;;  %v846_v59 = vpop.f32.mrf.mxu1  ;;  %v1077_v36 = vmax.f32 %v1061_v31, 0.0 }
 0x370   :  { %v1000_v20 = vpop.f32.mrf.mxu0  ;;  %v855_v44 = vadd.f32 %v2284_v22, %v3009_v51  ;;  %v847_v35 = vadd.f32 %v846_v59, %v3011_v27 }
 0x371   :  { %v1062_v10 = vadd.f32 %v3016_v3, %v1039_v2  ;;  %v1037_v60 = vadd.f32 %v1000_v20, %v831_v7  ;;  %v1075_v2 = vmax.f32 %v1059_v1, 0.0 }
 0x372   :  { %v2315_v13 = vpop.f32.mrf.mxu0 }
 0x373   :  { %v1078_v42 = vmax.f32 %v1062_v10, 0.0  ;;  %v1060_v0 = vadd.f32 %v3016_v3, %v1037_v60  ;;  %v1042_v45 = vadd.f32 %v2315_v13, %v852_v30 }
 0x374   :  { %v1013_v18 = vpop.f32.mrf.mxu0 }
 0x375   :  { %v1076_v52 = vmax.f32 %v1060_v0, 0.0  ;;  %v1065_v58 = vadd.f32 %v3016_v3, %v1042_v45  ;;  %v1040_v46 = vadd.f32 %v1013_v18, %v844_v9  ;;  %v3084_v20 = vpack.c.bf16 %v1078_v42, %v1077_v36 }
 0x376   :  { %v2316_v7 = vpop.f32.mrf.mxu0 }
 0x377   :  { %v1063_v56 = vadd.f32 %v3016_v3, %v1040_v46  ;;  %v1043_v14 = vadd.f32 %v2316_v7, %v855_v44  ;;  %v3088_v13 = vpack.c.bf16 %v1076_v52, %v1075_v2  ;;  %v1081_v31 = vmax.f32 %v1065_v58, 0.0 }
 0x378   :  { %v1016_v10 = vpop.f32.mrf.mxu0  ;;  %v1094_v46 = vmul.f32 %v1078_v42, %v2793_v33  ;;  %v1089_v42 = vmul.f32 %v1073_v63, %v2831_v48  ;;  %v1085_v63 = vmul.f32 %v3281_v37, %v2867_v62 }
 0x379   :  { %v1066_v30 = vadd.f32 %v3016_v3, %v1043_v14  ;;  %v1041_v51 = vadd.f32 %v1016_v10, %v847_v35  ;;  %v1079_v22 = vmax.f32 %v1063_v56, 0.0  ;;  %v1097_v1 = vmul.f32 %v1081_v31, %v3277_v53 }
 0x37a   :  { %v1092_v35 = vmul.f32 %v1076_v52, %v2811_v40  ;;  %v1091_v14 = vmul.f32 %v1075_v2, %v2813_v41  ;;  %v1090_v10 = vmul.f32 %v1074_v43, %v2829_v47  ;;  %v3279_v2 = vmax.f32 %v3053_v8, 0.0 }
 0x37b   :  { %v1082_v60 = vmax.f32 %v1066_v30, 0.0  ;;  %v1064_v18 = vadd.f32 %v3016_v3, %v1041_v51  ;;  %v1095_v44 = vmul.f32 %v1079_v22, %v3276_v38  ;;  %v1093_v3 = vmul.f32 %v1077_v36, %v2795_v34 }
 0x37c   :  { %v3278_v36 = vmax.f32 %v3057_v50, 0.0  ;;  %v1102_v30 = vpack.c.bf16 %v1090_v10, %v1089_v42  ;;  %v1087_v51 = vmul.f32 %v3279_v2, %v2849_v55  ;;  %v1086_v43 = vmul.f32 %v3280_v57, %v2865_v61 }
 0x37d   :  { %v1098_v9 = vmul.f32 %v1082_v60, %v2771_v24  ;;  %v1080_v0 = vmax.f32 %v1064_v18, 0.0  ;;  %v3094_v27 = vpack.c.bf16 %v1082_v60, %v1081_v31  ;;  %v1104_v56 = vpack.c.bf16 %v1094_v46, %v1093_v3 }
 0x37e   :  { %v1103_v31 = vpack.c.bf16 %v1092_v35, %v1091_v14  ;;  %v1088_v52 = vmul.f32 %v3278_v36, %v2847_v54  ;;  %v3282_v50 = vmax.f32 %v3030_v26, 0.0  ;;  %v1100_v18 = vpack.c.bf16 %v1086_v43, %v1085_v63  ;;  %v2522_v26 = vld [vmem:[#allocation7 + $0x68] sm:$0xff]  }
 0x37f   :  { %v1096_v45 = vmul.f32 %v1080_v0, %v2773_v25  ;;  %v1106_v59 = vpack.c.bf16 %v1098_v9, %v1097_v1  ;;  %v3098_v58 = vpack.c.bf16 %v1080_v0, %v1079_v22  ;;  %v3283_v8 = vmax.f32 %v3025_v21, 0.0  ;;  %v2520_v9 = vld [vmem:[#allocation7 + $0x78] sm:$0xff]   ;;  %v2523_v0 = vld [vmem:[#allocation7 + $0x60] sm:$0xff]  }
 0x380   :  { %v1101_v22 = vpack.c.bf16 %v1088_v52, %v1087_v51  ;;  %v1084_v60 = vmul.f32 %v3282_v50, %v2883_v4  ;;  %v2524_v21 = vld [vmem:[#allocation7 + $0x58] sm:$0xff]  }
 0x381   :  { %2317 = vmatprep.subr.bf16.mxu1 %v1106_v59  ;;  %v1105_v7 = vpack.c.bf16 %v1096_v45, %v1095_v44  ;;  %v1083_v1 = vmul.f32 %v3283_v8, %v2885_v5 }
 0x382   :  { %2318 = vmatpush3.bf16.msra.mxu1 %v1106_v59 }
 0x383   :  { %2319 = vmatprep.subr.bf16.mxu1 %v1105_v7  ;;  %v1099_v23 = vpack.c.bf16 %v1084_v60, %v1083_v1 }
 0x386   :  { %2320 = vmatpush3.bf16.msra.mxu1 %v1105_v7 }
 0x387   :  { %2321 = vmatprep.subr.bf16.mxu1 %v1104_v56 }
 0x38a   :  { %2322 = vmatpush3.bf16.msra.mxu1 %v1104_v56 }
 0x38b   :  { %2323 = vmatprep.subr.bf16.mxu1 %v1103_v31 }
 0x38e   :  { %2324 = vmatpush3.bf16.msra.mxu1 %v1103_v31 }
 0x38f   :  { %2325 = vmatprep.subr.bf16.mxu1 %v1102_v30 }
 0x392   :  { %2326 = vmatpush3.bf16.msra.mxu1 %v1102_v30 }
 0x393   :  { %2327 = vmatprep.subr.bf16.mxu1 %v1101_v22 }
 0x396   :  { %2328 = vmatpush3.bf16.msra.mxu1 %v1101_v22 }
 0x397   :  { %2329 = vmatprep.subr.bf16.mxu1 %v1100_v18 }
 0x39a   :  { %2330 = vmatpush3.bf16.msra.mxu1 %v1100_v18 }
 0x39b   :  { %2331 = vmatprep.subr.bf16.mxu1 %v1099_v23 }
 0x39e   :  { %2332 = vmatpush3.bf16.msra.mxu1 %v1099_v23 }
 0x39f   :  { %2381 = vmatprep.subr.bf16.mxu1 %v2520_v9 }
 0x3a1   :  { %2334 = vmatmul.mubr.bf16.vlgmr.msra.gmra.mxu1 %v2891_v11  ;;  %v2525_v11 = vld [vmem:[#allocation7 + $0x50] sm:$0xff]  }
 0x3a2   :  { %2337 = vmatprep.mubr.bf16.mxu1 %v2893_v12  ;;  %2382 = vmatpush3.bf16.msra.mxu1 %v2520_v9  ;;  %v2526_v12 = vld [vmem:[#allocation7 + $0x48] sm:$0xff]  }
 0x3a3   :  { %2383 = vmatprep.subr.bf16.mxu1 %v2521_v39 }
 0x3a6   :  { %2384 = vmatpush3.bf16.msra.mxu1 %v2521_v39 }
 0x3a7   :  { %2385 = vmatprep.subr.bf16.mxu1 %v2522_v26 }
 0x3a9   :  { %2338 = vmatmul.mubr.bf16.gmra.mxu1 %v2897_v15  ;;  %v2527_v15 = vld [vmem:[#allocation7 + $0x40] sm:$0xff]  }
 0x3aa   :  { %2341 = vmatprep.mubr.bf16.mxu1 %v2899_v16  ;;  %2386 = vmatpush3.bf16.msra.mxu1 %v2522_v26 }
 0x3ab   :  { %2387 = vmatprep.subr.bf16.mxu1 %v2523_v0 }
 0x3ae   :  { %2388 = vmatpush3.bf16.msra.mxu1 %v2523_v0 }
 0x3af   :  { %2389 = vmatprep.subr.bf16.mxu1 %v2524_v21 }
 0x3b1   :  { %2342 = vmatmul.mubr.bf16.gmra.mxu1 %v2903_v28 }
 0x3b2   :  { %2345 = vmatprep.mubr.bf16.mxu1 %v2905_v29  ;;  %2390 = vmatpush3.bf16.msra.mxu1 %v2524_v21 }
 0x3b3   :  { %2391 = vmatprep.subr.bf16.mxu1 %v2525_v11 }
 0x3b6   :  { %2392 = vmatpush3.bf16.msra.mxu1 %v2525_v11 }
 0x3b7   :  { %2393 = vmatprep.subr.bf16.mxu1 %v2526_v12 }
 0x3b9   :  { %2346 = vmatmul.mubr.bf16.gmra.mxu1 %v2909_v32 }
 0x3ba   :  { %2394 = vmatpush3.bf16.msra.mxu1 %v2526_v12 }
 0x3bb   :  { %2395 = vmatprep.subr.bf16.mxu1 %v2527_v15 }
 0x3be   :  { %2396 = vmatpush3.bf16.msra.mxu1 %v2527_v15 }
 0x461   :  { %v2335_v16 = vpop.f32.mrf.mxu1 }
 0x462   :  { %v3145_v46 = vmul.f32 %v2335_v16, %v2867_v62 }
 0x463   :  { %v1141_v44 = vpop.f32.mrf.mxu1 }
 0x464   :  { %v3139_v29 = vmul.f32 %v1141_v44, %v2885_v5 }
 0x465   :  { %v2336_v45 = vpop.f32.mrf.mxu1 }
 0x466   :  { %v3136_v59 = vmul.f32 %v2336_v45, %v2865_v61 }
 0x467   :  { %v1144_v28 = vpop.f32.mrf.mxu1 }
 0x468   :  { %v3142_v32 = vmul.f32 %v1144_v28, %v2883_v4  ;;  %v1382_v35 = vpack.c.bf16 %v3136_v59, %v3145_v46 }
 0x469   :  { %v2339_v7 = vpop.f32.mrf.mxu1 }
 0x46a   :  { %v1381_v3 = vpack.c.bf16 %v3142_v32, %v3139_v29  ;;  %v1210_v52 = vmul.f32 %v2339_v7, %v2831_v48 }
 0x46b   :  { %v1157_v56 = vpop.f32.mrf.mxu1 }
 0x46c   :  { %2397 = vmatprep.mubr.bf16.mxu1 %v1381_v3  ;;  %v1208_v42 = vmul.f32 %v1157_v56, %v2849_v55 }
 0x46d   :  { %v2340_v14 = vpop.f32.mrf.mxu1  ;;  %2398 = vmatmul.mubr.bf16.vlgmr.msra.gmra.mxu1 %v1382_v35 }
 0x46e   :  { %v1211_v10 = vmul.f32 %v2340_v14, %v2829_v47 }
 0x46f   :  { %v1160_v31 = vpop.f32.mrf.mxu1 }
 0x470   :  { %v1209_v36 = vmul.f32 %v1160_v31, %v2847_v54  ;;  %v1384_v51 = vpack.c.bf16 %v1211_v10, %v1210_v52 }
 0x471   :  { %v2343_v30 = vpop.f32.mrf.mxu1 }
 0x472   :  { %v1383_v2 = vpack.c.bf16 %v1209_v36, %v1208_v42  ;;  %v1214_v60 = vmul.f32 %v2343_v30, %v2795_v34 }
 0x473   :  { %v1173_v57 = vpop.f32.mrf.mxu1 }
 0x474   :  { %2401 = vmatprep.mubr.bf16.mxu1 %v1383_v2  ;;  %v1212_v63 = vmul.f32 %v1173_v57, %v2813_v41  ;;  %v1230_v56 = vmul.f32 %v1214_v60, %v2795_v34  ;;  %v1227_v2 = vmul.f32 %v1211_v10, %v2829_v47  ;;  %v1226_v57 = vmul.f32 %v1210_v52, %v2831_v48 }
 0x475   :  { %v2344_v43 = vpop.f32.mrf.mxu1  ;;  %2402 = vmatmul.mubr.bf16.gmra.mxu1 %v1384_v51  ;;  %v1222_v10 = vmul.f32 %v3145_v46, %v2867_v62  ;;  %v1221_v52 = vmul.f32 %v3142_v32, %v2883_v4  ;;  %v2545_v46 = vld [vmem:[#allocation2 + $0x10] sm:$0xff]   ;;  %v2530_v32 = vld [vmem:[#allocation7 + $0x28] sm:$0xff]  }
 0x476   :  { %v1215_v22 = vmul.f32 %v2344_v43, %v2793_v33  ;;  %v1228_v30 = vmul.f32 %v1212_v63, %v2813_v41  ;;  %v1225_v43 = vmul.f32 %v1209_v36, %v2847_v54  ;;  %v1220_v36 = vmul.f32 %v3139_v29, %v2885_v5  ;;  %v2547_v29 = vld [vmem:[#allocation2 + $0x20] sm:$0xff]  }
 0x477   :  { %v1176_v37 = vpop.f32.mrf.mxu1 }
 0x478   :  { %v1213_v50 = vmul.f32 %v1176_v37, %v2811_v40  ;;  %v1386_v1 = vpack.c.bf16 %v1215_v22, %v1214_v60  ;;  %v1231_v3 = vmul.f32 %v1215_v22, %v2793_v33  ;;  %v1239_v22 = vpack.c.bf16 %v1227_v2, %v1226_v57 }
 0x479   :  { %v2347_v18 = vpop.f32.mrf.mxu1  ;;  %v1224_v37 = vmul.f32 %v1208_v42, %v2849_v55  ;;  %v1236_v42 = vpack.c.bf16 %v1221_v52, %v1220_v36 }
 0x47a   :  { %v1385_v8 = vpack.c.bf16 %v1213_v50, %v1212_v63  ;;  %v1218_v9 = vmul.f32 %v2347_v18, %v3277_v53  ;;  %v1229_v14 = vmul.f32 %v1213_v50, %v2811_v40  ;;  %v1241_v31 = vpack.c.bf16 %v1231_v3, %v1230_v56  ;;  %v2528_v18 = vld [vmem:[#allocation7 + $0x38] sm:$0xff]  }
 0x47b   :  { %v1189_v23 = vpop.f32.mrf.mxu1  ;;  %v1223_v50 = vmul.f32 %v3136_v59, %v2865_v61  ;;  %v1238_v60 = vpack.c.bf16 %v1225_v43, %v1224_v37  ;;  %v2529_v59 = vld [vmem:[#allocation7 + $0x30] sm:$0xff]  }
 0x47c   :  { %2405 = vmatprep.mubr.bf16.mxu1 %v1385_v8  ;;  %v1216_v26 = vmul.f32 %v1189_v23, %v3276_v38  ;;  %v1234_v11 = vmul.f32 %v1218_v9, %v3277_v53  ;;  %v1240_v51 = vpack.c.bf16 %v1229_v14, %v1228_v30  ;;  %v2544_v8 = vld [vmem:[#allocation2 + $0x8] sm:$0xff]   ;;  %v2546_v23 = vld [vmem:[#allocation2 + $0x18] sm:$0xff]  }
 0x47d   :  { %v2348_v39 = vpop.f32.mrf.mxu1  ;;  %2406 = vmatmul.mubr.bf16.gmra.mxu1 %v1386_v1  ;;  %v1237_v63 = vpack.c.bf16 %v1223_v50, %v1222_v10  ;;  %v2531_v1 = vld [vmem:[#allocation7 + $0x20] sm:$0xff]  }
 0x47e   :  { %v1219_v0 = vmul.f32 %v2348_v39, %v2771_v24  ;;  %v1232_v16 = vmul.f32 %v1216_v26, %v3276_v38  ;;  %v2533_v39 = vld [vmem:[#allocation7 + $0x10] sm:$0xff]  }
 0x47f   :  { %v1192_v21 = vpop.f32.mrf.mxu1 }
 0x480   :  { %v1235_v12 = vmul.f32 %v1219_v0, %v2771_v24  ;;  %v1217_v15 = vmul.f32 %v1192_v21, %v2773_v25  ;;  %v1388_v7 = vpack.c.bf16 %v1219_v0, %v1218_v9  ;;  %v2532_v9 = vld [vmem:[#allocation7 + $0x18] sm:$0xff]   ;;  %v2549_v0 = vld [vmem:[#allocation2 + $0x30] sm:$0xff]   ;;  %v2534_v21 = vld [vmem:[#allocation7 + $0x8] sm:$0xff]  }
 0x482   :  { %v1233_v44 = vmul.f32 %v1217_v15, %v2773_v25  ;;  %v1387_v45 = vpack.c.bf16 %v1217_v15, %v1216_v26  ;;  %v1243_v28 = vpack.c.bf16 %v1235_v12, %v1234_v11  ;;  %v2548_v26 = vld [vmem:[#allocation2 + $0x28] sm:$0xff]   ;;  %v2535_v11 = vld [vmem:[#allocation7] sm:$0xff]   ;;  %v2550_v12 = vld [vmem:[#allocation2 + $0x38] sm:$0xff]  }
 0x483   :  { %v2536_v15 = vld [vmem:[#allocation7 + $0xb8] sm:$0xff]  }
 0x484   :  { %2349 = vmatprep.subr.bf16.mxu0 %v1243_v28  ;;  %2409 = vmatprep.mubr.bf16.mxu1 %v1387_v45  ;;  %v1242_v35 = vpack.c.bf16 %v1233_v44, %v1232_v16  ;;  %v2537_v16 = vld [vmem:[#allocation7 + $0xb0] sm:$0xff]   ;;  %v2538_v44 = vld [vmem:[#allocation7 + $0xa8] sm:$0xff]   ;;  %v2539_v45 = vld [vmem:[#allocation7 + $0xa0] sm:$0xff]  }
 0x485   :  { %2350 = vmatpush3.bf16.msra.mxu0 %v1243_v28  ;;  %2410 = vmatmul.mubr.bf16.gmra.mxu1 %v1388_v7 }
 0x486   :  { %2351 = vmatprep.subr.bf16.mxu0 %v1242_v35  ;;  %2445 = vmatprep.subr.bf16.mxu1 %v2536_v15 }
 0x487   :  { %2446 = vmatpush3.bf16.msra.mxu1 %v2536_v15 }
 0x488   :  { %2447 = vmatprep.subr.bf16.mxu1 %v2537_v16 }
 0x489   :  { %2352 = vmatpush3.bf16.msra.mxu0 %v1242_v35 }
 0x48a   :  { %2353 = vmatprep.subr.bf16.mxu0 %v1241_v31 }
 0x48b   :  { %2448 = vmatpush3.bf16.msra.mxu1 %v2537_v16 }
 0x48c   :  { %2449 = vmatprep.subr.bf16.mxu1 %v2538_v44 }
 0x48d   :  { %2354 = vmatpush3.bf16.msra.mxu0 %v1241_v31 }
 0x48e   :  { %2355 = vmatprep.subr.bf16.mxu0 %v1240_v51 }
 0x48f   :  { %2450 = vmatpush3.bf16.msra.mxu1 %v2538_v44 }
 0x490   :  { %2451 = vmatprep.subr.bf16.mxu1 %v2539_v45 }
 0x491   :  { %2356 = vmatpush3.bf16.msra.mxu0 %v1240_v51 }
 0x492   :  { %2357 = vmatprep.subr.bf16.mxu0 %v1239_v22 }
 0x493   :  { %2452 = vmatpush3.bf16.msra.mxu1 %v2539_v45 }
 0x495   :  { %2358 = vmatpush3.bf16.msra.mxu0 %v1239_v22 }
 0x496   :  { %2359 = vmatprep.subr.bf16.mxu0 %v1238_v60 }
 0x499   :  { %2360 = vmatpush3.bf16.msra.mxu0 %v1238_v60 }
 0x49a   :  { %2361 = vmatprep.subr.bf16.mxu0 %v1237_v63 }
 0x49d   :  { %2362 = vmatpush3.bf16.msra.mxu0 %v1237_v63 }
 0x49e   :  { %2363 = vmatprep.subr.bf16.mxu0 %v1236_v42 }
 0x4a1   :  { %2364 = vmatpush3.bf16.msra.mxu0 %v1236_v42 }
 0x4a2   :  { %2413 = vmatprep.subr.bf16.mxu0 %v2528_v18 }
 0x4a4   :  { %2366 = vmatmul.mubr.bf16.vlgmr.msra.gmra.mxu0 %v2544_v8 }
 0x4a5   :  { %2414 = vmatpush3.bf16.msra.mxu0 %v2528_v18  ;;  %2369 = vmatprep.mubr.bf16.mxu0 %v2545_v46 }
 0x4a6   :  { %2415 = vmatprep.subr.bf16.mxu0 %v2529_v59 }
 0x4a9   :  { %2416 = vmatpush3.bf16.msra.mxu0 %v2529_v59 }
 0x4aa   :  { %2417 = vmatprep.subr.bf16.mxu0 %v2530_v32 }
 0x4ac   :  { %2370 = vmatmul.mubr.bf16.gmra.mxu0 %v2546_v23 }
 0x4ad   :  { %2418 = vmatpush3.bf16.msra.mxu0 %v2530_v32  ;;  %2373 = vmatprep.mubr.bf16.mxu0 %v2547_v29 }
 0x4ae   :  { %2419 = vmatprep.subr.bf16.mxu0 %v2531_v1 }
 0x4b1   :  { %2420 = vmatpush3.bf16.msra.mxu0 %v2531_v1 }
 0x4b2   :  { %2421 = vmatprep.subr.bf16.mxu0 %v2532_v9 }
 0x4b4   :  { %2374 = vmatmul.mubr.bf16.gmra.mxu0 %v2548_v26 }
 0x4b5   :  { %2422 = vmatpush3.bf16.msra.mxu0 %v2532_v9  ;;  %2377 = vmatprep.mubr.bf16.mxu0 %v2549_v0 }
 0x4b6   :  { %2423 = vmatprep.subr.bf16.mxu0 %v2533_v39 }
 0x4b9   :  { %2424 = vmatpush3.bf16.msra.mxu0 %v2533_v39 }
 0x4ba   :  { %2425 = vmatprep.subr.bf16.mxu0 %v2534_v21 }
 0x4bc   :  { %2378 = vmatmul.mubr.bf16.gmra.mxu0 %v2550_v12 }
 0x4bd   :  { %2426 = vmatpush3.bf16.msra.mxu0 %v2534_v21  ;;  %2429 = vmatprep.mubr.bf16.mxu0 %v3047_v17  ;;  %v2541_v17 = vld [vmem:[#allocation7 + $0x90] sm:$0xff]  }
 0x4be   :  { %2427 = vmatprep.subr.bf16.mxu0 %v2535_v11 }
 0x4c1   :  { %2428 = vmatpush3.bf16.msra.mxu0 %v2535_v11 }
 0x4c4   :  { %2430 = vmatmul.mubr.bf16.vlgmr.msra.gmra.mxu0 %v3036_v6  ;;  %v2540_v6 = vld [vmem:[#allocation7 + $0x98] sm:$0xff]  }
 0x4c5   :  { %2433 = vmatprep.mubr.bf16.mxu0 %v3075_v19  ;;  %2453 = vmatprep.subr.bf16.mxu1 %v2540_v6  ;;  %v2543_v19 = vld [vmem:[#allocation7 + $0x80] sm:$0xff]  }
 0x4c6   :  { %2454 = vmatpush3.bf16.msra.mxu1 %v2540_v6 }
 0x4c7   :  { %2455 = vmatprep.subr.bf16.mxu1 %v2541_v17 }
 0x4ca   :  { %2456 = vmatpush3.bf16.msra.mxu1 %v2541_v17 }
 0x4cc   :  { %2434 = vmatmul.mubr.bf16.gmra.mxu0 %v3067_v49  ;;  %v2542_v49 = vld [vmem:[#allocation7 + $0x88] sm:$0xff]  }
 0x4cd   :  { %2437 = vmatprep.mubr.bf16.mxu0 %v3088_v13  ;;  %2457 = vmatprep.subr.bf16.mxu1 %v2542_v49 }
 0x4ce   :  { %2458 = vmatpush3.bf16.msra.mxu1 %v2542_v49 }
 0x4cf   :  { %2459 = vmatprep.subr.bf16.mxu1 %v2543_v19 }
 0x4d2   :  { %2460 = vmatpush3.bf16.msra.mxu1 %v2543_v19 }
 0x4d4   :  { %2438 = vmatmul.mubr.bf16.gmra.mxu0 %v3084_v20 }
 0x4d5   :  { %2441 = vmatprep.mubr.bf16.mxu0 %v3098_v58 }
 0x4dc   :  { %2442 = vmatmul.mubr.bf16.gmra.mxu0 %v3094_v27 }
 0x564   :  { %v2367_v20 = vpop.f32.mrf.mxu0 }
 0x565   :  { %v1343_v35 = vmul.f32 %v2367_v20, %v2867_v62 }
 0x566   :  { %v1278_v13 = vpop.f32.mrf.mxu0 }
 0x567   :  { %v1341_v3 = vmul.f32 %v1278_v13, %v2885_v5 }
 0x568   :  { %v2368_v58 = vpop.f32.mrf.mxu0 }
 0x569   :  { %v1344_v28 = vmul.f32 %v2368_v58, %v2865_v61 }
 0x56a   :  { %v1281_v7 = vpop.f32.mrf.mxu0 }
 0x56b   :  { %v1342_v27 = vmul.f32 %v1281_v7, %v2883_v4  ;;  %v1697_v31 = vpack.c.bf16 %v1344_v28, %v1343_v35  ;;  %v3220_v28 = vld [vmem:[%s3252_s6] ss:$0 sm:$0xff]  ;;  %s2643_s6 = smov [#allocation8]  }
 0x56c   :  { %v2371_v56 = vpop.f32.mrf.mxu0  ;;  %s1926_s27 = sshll.u32 %s2643_s6, 4  ;;  %s1927_s27 = int_to_ptr.vmem [resolvable:$true] %s1926_s27 }
 0x56d   :  { %v1696_v14 = vpack.c.bf16 %v1342_v27, %v1341_v3  ;;  %v1347_v5 = vmul.f32 %v2371_v56, %v2831_v48  ;;  %s2611_s28 = scalar_lea.vmem %s1927_s27, 2048  ;;  %p2616_p2 = scmp.lt.s32.totalorder %s1927_s27, %s1927_s27 }
 0x56e   :  { %v1294_v30 = vpop.f32.mrf.mxu0  ;;  %p2612_p1 = scmp.ne.s32.totalorder %s1927_s27, %s2611_s28  ;;  %p2617_p3 = scmp.lt.s32.totalorder %s2611_s28, %s2611_s28 }
 0x56f   :  { %2461 = vmatprep.mubr.bf16.mxu1 %v1696_v14  ;;  %v1345_v43 = vmul.f32 %v1294_v30, %v2849_v55 }
 0x570   :  { %v2372_v2 = vpop.f32.mrf.mxu0  ;;  %2462 = vmatmul.mubr.bf16.vlgmr.msra.gmra.mxu1 %v1697_v31  ;;  %p2618_p4 = por %p2617_p3, %p2616_p2 }
 0x571   :  { %v1348_v51 = vmul.f32 %v2372_v2, %v2829_v47 }
 0x572   :  { %v1297_v57 = vpop.f32.mrf.mxu0  ;;  %p2619_p5 = pnand %p2618_p4, %p2612_p1 }
 0x573   :  { %v1346_v61 = vmul.f32 %v1297_v57, %v2847_v54  ;;  %v1699_v37 = vpack.c.bf16 %v1348_v51, %v1347_v5 }
 0x574   :  { %v2375_v22 = vpop.f32.mrf.mxu0 }
 0x575   :  { %v1698_v4 = vpack.c.bf16 %v1346_v61, %v1345_v43  ;;  %v1351_v55 = vmul.f32 %v2375_v22, %v2795_v34  ;;  %v2399_v34 = vpop.f32.mrf.mxu1 }
 0x576   :  { %v1310_v62 = vpop.f32.mrf.mxu0 }
 0x577   :  { %2465 = vmatprep.mubr.bf16.mxu1 %v1698_v4  ;;  %v1349_v52 = vmul.f32 %v1310_v62, %v2813_v41  ;;  %v1488_v32 = vpop.f32.mrf.mxu1 }
 0x578   :  { %v2376_v50 = vpop.f32.mrf.mxu0  ;;  %2466 = vmatmul.mubr.bf16.gmra.mxu1 %v1699_v37 }
 0x579   :  { %v1352_v60 = vmul.f32 %v2376_v50, %v2793_v33  ;;  %v2400_v1 = vpop.f32.mrf.mxu1 }
 0x57a   :  { %v1313_v10 = vpop.f32.mrf.mxu0 }
 0x57b   :  { %v1350_v47 = vmul.f32 %v1313_v10, %v2811_v40  ;;  %v1701_v36 = vpack.c.bf16 %v1352_v60, %v1351_v55  ;;  %v1491_v23 = vpop.f32.mrf.mxu1 }
 0x57c   :  { %v2379_v63 = vpop.f32.mrf.mxu0 }
 0x57d   :  { %v1700_v54 = vpack.c.bf16 %v1350_v47, %v1349_v52  ;;  %v1355_v41 = vmul.f32 %v2379_v63, %v3277_v53  ;;  %v2403_v29 = vpop.f32.mrf.mxu1 }
 0x57e   :  { %v1326_v48 = vpop.f32.mrf.mxu0 }
 0x57f   :  { %2469 = vmatprep.mubr.bf16.mxu1 %v1700_v54  ;;  %v1353_v8 = vmul.f32 %v1326_v48, %v3276_v38  ;;  %v1504_v9 = vpop.f32.mrf.mxu1 }
 0x580   :  { %v2380_v42 = vpop.f32.mrf.mxu0  ;;  %2470 = vmatmul.mubr.bf16.gmra.mxu1 %v1701_v36 }
 0x581   :  { %v1356_v18 = vmul.f32 %v2380_v42, %v2771_v24  ;;  %v2404_v39 = vpop.f32.mrf.mxu1 }
 0x582   :  { %v1329_v59 = vpop.f32.mrf.mxu0 }
 0x583   :  { %v1354_v33 = vmul.f32 %v1329_v59, %v2773_v25  ;;  %v1703_v40 = vpack.c.bf16 %v1356_v18, %v1355_v41  ;;  %v1507_v26 = vpop.f32.mrf.mxu1 }
 0x584   :  { %v2431_v24 = vpop.f32.mrf.mxu0 }
 0x585   :  { %v1702_v46 = vpack.c.bf16 %v1354_v33, %v1353_v8  ;;  %v2407_v0 = vpop.f32.mrf.mxu1  ;;  %v1642_v13 = vadd.f32 %v2431_v24, %v2399_v34 }
 0x586   :  { %v1633_v21 = vpop.f32.mrf.mxu0 }
 0x587   :  { %2473 = vmatprep.mubr.bf16.mxu1 %v1702_v46  ;;  %v1520_v38 = vpop.f32.mrf.mxu1  ;;  %v1634_v7 = vadd.f32 %v1633_v21, %v1488_v32 }
 0x588   :  { %2474 = vmatmul.mubr.bf16.gmra.mxu1 %v1703_v40  ;;  %v2432_v11 = vpop.f32.mrf.mxu0 }
 0x589   :  { %v2408_v25 = vpop.f32.mrf.mxu1  ;;  %v1645_v56 = vadd.f32 %v2432_v11, %v2400_v1 }
 0x58a   :  { %v1636_v12 = vpop.f32.mrf.mxu0 }
 0x58b   :  { %v3207_v53 = vpop.f32.mrf.mxu1  ;;  %v1637_v2 = vadd.f32 %v1636_v12, %v1491_v23 }
 0x58c   :  { %v2435_v15 = vpop.f32.mrf.mxu0 }
 0x58d   :  { %v3209_v16 = vpop.f32.mrf.mxu1  ;;  %v1658_v5 = vadd.f32 %v2435_v15, %v2403_v29 }
 0x58e   :  { %v1649_v44 = vpop.f32.mrf.mxu0 }
 0x58f   :  { %v3211_v45 = vpop.f32.mrf.mxu1  ;;  %v1650_v62 = vadd.f32 %v1649_v44, %v1504_v9 }
 0x590   :  { %v2436_v6 = vpop.f32.mrf.mxu0 }
 0x591   :  { %v3213_v17 = vpop.f32.mrf.mxu1  ;;  %v1661_v47 = vadd.f32 %v2436_v6, %v2404_v39 }
 0x592   :  { %v1652_v49 = vpop.f32.mrf.mxu0 }
 0x593   :  { %v3215_v19 = vpop.f32.mrf.mxu1  ;;  %v1653_v36 = vadd.f32 %v1652_v49, %v1507_v26 }
 0x594   :  { %v2439_v20 = vpop.f32.mrf.mxu0 }
 0x595   :  { %v1674_v8 = vadd.f32 %v2439_v20, %v2407_v0 }
 0x596   :  { %v1665_v27 = vpop.f32.mrf.mxu0 }
 0x597   :  { %v1666_v40 = vadd.f32 %v1665_v27, %v1520_v38 }
 0x598   :  { %v2440_v43 = vpop.f32.mrf.mxu0 }
 0x599   :  { %v1677_v29 = vadd.f32 %v2440_v43, %v2408_v25 }
 0x59a   :  { %v1668_v10 = vpop.f32.mrf.mxu0 }
 0x59b   :  { %v1669_v24 = vadd.f32 %v1668_v10, %v3207_v53 }
 0x59c   :  { %v2443_v18 = vpop.f32.mrf.mxu0 }
 0x59d   :  { %v1690_v12 = vadd.f32 %v2443_v18, %v3209_v16 }
 0x59e   :  { %v1681_v1 = vpop.f32.mrf.mxu0 }
 0x59f   :  { %v1682_v6 = vadd.f32 %v1681_v1, %v3211_v45 }
 0x5a0   :  { %v2444_v11 = vpop.f32.mrf.mxu0 }
 0x5a2   :  { %v1684_v53 = vpop.f32.mrf.mxu0 }
 0x5a3   :  { %v1685_v27 = vadd.f32 %v1684_v53, %v3215_v19 }
 0x630   :  { %v2463_v58 = vpop.f32.mrf.mxu1 }
 0x631   :  { %v1868_v3 = vadd.f32 %v2463_v58, %v1642_v13  ;;  %v1693_v58 = vadd.f32 %v2444_v11, %v3213_v17 }
 0x632   :  { %v1803_v35 = vpop.f32.mrf.mxu1 }
 0x633   :  { %v1891_v14 = vadd.f32 %v3220_v28, %v1868_v3  ;;  %v1866_v31 = vadd.f32 %v1803_v35, %v1634_v7 }
 0x634   :  { %v2464_v30 = vpop.f32.mrf.mxu1 }
 0x635   :  { %1907 = vst [vmem:[#allocation8 + $0x10] sm:$0xff] %v1891_v14  ;;  %v1889_v51 = vadd.f32 %v3220_v28, %v1866_v31  ;;  %v1869_v57 = vadd.f32 %v2464_v30, %v1645_v56 }
 0x636   :  { %v1806_v61 = vpop.f32.mrf.mxu1 }
 0x637   :  { %1905 = vst [vmem:[#allocation8] sm:$0xff] %v1889_v51  ;;  %v1892_v22 = vadd.f32 %v3220_v28, %v1869_v57  ;;  %v1867_v4 = vadd.f32 %v1806_v61, %v1637_v2 }
 0x638   :  { %v2467_v37 = vpop.f32.mrf.mxu1 }
 0x639   :  { %1908 = vst [vmem:[#allocation8 + $0x18] sm:$0xff] %v1892_v22  ;;  %v1890_v50 = vadd.f32 %v3220_v28, %v1867_v4  ;;  %v1872_v60 = vadd.f32 %v2467_v37, %v1658_v5 }
 0x63a   :  { %v1819_v52 = vpop.f32.mrf.mxu1 }
 0x63b   :  { %1906 = vst [vmem:[#allocation8 + $0x8] sm:$0xff] %v1890_v50  ;;  %v1895_v55 = vadd.f32 %v3220_v28, %v1872_v60  ;;  %v1870_v63 = vadd.f32 %v1819_v52, %v1650_v62 }
 0x63c   :  { %v2468_v54 = vpop.f32.mrf.mxu1 }
 0x63d   :  { %1911 = vst [vmem:[#allocation8 + $0x30] sm:$0xff] %v1895_v55  ;;  %v1893_v48 = vadd.f32 %v3220_v28, %v1870_v63  ;;  %v1873_v42 = vadd.f32 %v2468_v54, %v1661_v47 }
 0x63e   :  { %v1822_v59 = vpop.f32.mrf.mxu1 }
 0x63f   :  { %1909 = vst [vmem:[#allocation8 + $0x20] sm:$0xff] %v1893_v48  ;;  %v1896_v33 = vadd.f32 %v3220_v28, %v1873_v42  ;;  %v1871_v41 = vadd.f32 %v1822_v59, %v1653_v36 }
 0x640   :  { %v2471_v46 = vpop.f32.mrf.mxu1 }
 0x641   :  { %1912 = vst [vmem:[#allocation8 + $0x38] sm:$0xff] %v1896_v33  ;;  %v1894_v34 = vadd.f32 %v3220_v28, %v1871_v41  ;;  %v1876_v32 = vadd.f32 %v2471_v46, %v1674_v8 }
 0x642   :  { %v1835_v23 = vpop.f32.mrf.mxu1 }
 0x643   :  { %1910 = vst [vmem:[#allocation8 + $0x28] sm:$0xff] %v1894_v34  ;;  %v1899_v9 = vadd.f32 %v3220_v28, %v1876_v32  ;;  %v1874_v39 = vadd.f32 %v1835_v23, %v1666_v40 }
 0x644   :  { %v2472_v26 = vpop.f32.mrf.mxu1 }
 0x645   :  { %1915 = vst [vmem:[#allocation8 + $0x50] sm:$0xff] %v1899_v9  ;;  %v1897_v0 = vadd.f32 %v3220_v28, %v1874_v39  ;;  %v1877_v21 = vadd.f32 %v2472_v26, %v1677_v29 }
 0x646   :  { %v1838_v38 = vpop.f32.mrf.mxu1 }
 0x647   :  { %1913 = vst [vmem:[#allocation8 + $0x40] sm:$0xff] %v1897_v0  ;;  %v1900_v15 = vadd.f32 %v3220_v28, %v1877_v21  ;;  %v1875_v44 = vadd.f32 %v1838_v38, %v1669_v24 }
 0x648   :  { %v2475_v25 = vpop.f32.mrf.mxu1 }
 0x649   :  { %1916 = vst [vmem:[#allocation8 + $0x58] sm:$0xff] %v1900_v15  ;;  %v1898_v49 = vadd.f32 %v3220_v28, %v1875_v44  ;;  %v1880_v20 = vadd.f32 %v2475_v25, %v1690_v12 }
 0x64a   :  { %v1851_v13 = vpop.f32.mrf.mxu1 }
 0x64b   :  { %1914 = vst [vmem:[#allocation8 + $0x48] sm:$0xff] %v1898_v49  ;;  %v1903_v7 = vadd.f32 %v3220_v28, %v1880_v20  ;;  %v1878_v3 = vadd.f32 %v1851_v13, %v1682_v6 }
 0x64c   :  { %v2476_v16 = vpop.f32.mrf.mxu1 }
 0x64d   :  { %1919 = vst [vmem:[#allocation8 + $0x70] sm:$0xff] %v1903_v7  ;;  %v1901_v35 = vadd.f32 %v3220_v28, %v1878_v3  ;;  %v1881_v56 = vadd.f32 %v2476_v16, %v1693_v58 }
 0x64e   :  { %v1854_v45 = vpop.f32.mrf.mxu1 }
 0x64f   :  { %1917 = vst [vmem:[#allocation8 + $0x60] sm:$0xff] %v1901_v35  ;;  %v1904_v14 = vadd.f32 %v3220_v28, %v1881_v56  ;;  %v1879_v31 = vadd.f32 %v1854_v45, %v1685_v27 }
 0x651   :  { %1920 = vst [vmem:[#allocation8 + $0x78] sm:$0xff] %v1904_v14  ;;  %v1902_v17 = vadd.f32 %v3220_v28, %v1879_v31 }
 0x653   :  { %1918 = vst [vmem:[#allocation8 + $0x68] sm:$0xff] %v1902_v17 }
 0x654   :  { %2622 = shalt.err (!%p2619_p5)
}
 0x655   :  { %s2644_s29 = smov 128   ;;  %s2645_s30 = smov 8  }
 0x656   :  { %1932 = dma.vmem_to_hbm [thread:$0]  %s1927_s27, 2048, %s3253_s7, [#allocation4], %s2644_s29, %s2644_s29, %s2645_s30  }
 0x657   :  { %2635 = dma.done.wait [#allocation4], 2048  }
 0x658   :  { %2636 = vsyncadd [#allocation4], 4294965248 }
 0x659   :  { %1936 = vsyncpa [#allocation3], 1 }
 0x65a   :  { %1937 = vsyncpa [#allocation6], 1 }
 0x65b   :  { %1938 = vsyncpa [#allocation4], 1 }

</bundles_post_ra>
